<compile_context>
chip_gen: v6e
topology: v6e:2x2x1
jax: 0.10.0
libtpu: 0.0.40
codegen_flags: <defaults>
</compile_context>

<pallas_src>
import functools
import math

import jax
import jax.numpy as jnp
from jax import lax
from jax.experimental import pallas as pl
from jax.experimental.pallas import tpu as pltpu


def _hunk_rnn_kernel(S, H,
                     x_ref,        # (S*B, 2I) bf16 : row-block s = [x(s) | x(S-1-s)]
                     h0_ref,       # (B, 2H)   f32  : [h0_fwd | h0_bwd]
                     wih_ref,      # (2I, 6H)  bf16 : gate-major block input weights
                     whh_ref,      # (2H, 6H)  bf16 : gate-major block recurrent weights
                     bias_ref,     # (1, 6H)   f32  : b_ih (+ b_hh folded for r,z gates)
                     bhhn_ref,     # (1, 2H)   f32  : b_hh for the n gate (fwd|bwd)
                     attnw_ref,    # (2H, 2H)  bf16 : hunkattn weight, transposed
                     attnb_ref,    # (1, 2H)   f32
                     combw_ref,    # (1, 2H)   f32
                     hunks_ref,    # (B, 2H)   f32  output: attention-pooled hunks
                     hid_ref,      # (B, 2H)   f32  output: [h_fwd_final | h_bwd_final]
                     out_sc):      # (S*B, 2H) f32  scratch: bi-GRU output slab
    B = h0_ref.shape[0]
    H2, H4, H6 = 2 * H, 4 * H, 6 * H

    # ---- hoisted input projection: one matmul for all steps & both directions ----
    gi_all = (jnp.dot(x_ref[...], wih_ref[...],
                      preferred_element_type=jnp.float32)
              + bias_ref[...])                                      # (S*B, 6H) f32

    whh = whh_ref[...]                                              # (2H, 6H) bf16
    bhh_n = jnp.broadcast_to(bhhn_ref[...], (B, H2))                # hoisted broadcast

    # ---- fused bidirectional GRU recurrence: one MXU push per step ----
    h = h0_ref[...]                                                 # (B, 2H) f32
    # TODO(synk): for large S, switch to lax.fori_loop with dynamic ref indexing on
    # gi/out scratches; at S=8 the fully-unrolled static loop is preferable.
    for s in range(S):
        gi = gi_all[s * B:(s + 1) * B, :]                           # (B, 6H)
        gh = jnp.dot(h.astype(jnp.bfloat16), whh,
                     preferred_element_type=jnp.float32)            # (B, 6H)
        rz = jax.nn.sigmoid(gi[:, 0:H4] + gh[:, 0:H4])              # r|z, both dirs
        r, z = rz[:, 0:H2], rz[:, H2:H4]
        n = jnp.tanh(gi[:, H4:H6] + r * (gh[:, H4:H6] + bhh_n))
        h = (1.0 - z) * n + z * h
        # forward half belongs to timestep s, backward half to timestep S-1-s.
        out_sc[s * B:(s + 1) * B, 0:H] = h[:, 0:H]
        out_sc[(S - 1 - s) * B:(S - s) * B, H:H2] = h[:, H:H2]

    hid_ref[...] = h        # [final fwd hidden | final bwd hidden], split in wrapper

    # ---- attention: one matmul + one relu + one cross-lane reduction ----
    out_all = out_sc[...]                                           # (S*B, 2H) f32
    ann = (jnp.dot(out_all.astype(jnp.bfloat16), attnw_ref[...],
                   preferred_element_type=jnp.float32)
           + attnb_ref[...])
    ann = jnp.maximum(ann, 0.0)                                     # relu
    logits = jnp.sum(ann * combw_ref[...], axis=-1, keepdims=True)  # (S*B, 1)

    # softmax over the S axis; rows are grouped [s*B + b] (batch fast-varying).
    m = logits[0:B, :]
    for s in range(1, S):
        m = jnp.maximum(m, logits[s * B:(s + 1) * B, :])
    es = [jnp.exp(logits[s * B:(s + 1) * B, :] - m) for s in range(S)]
    denom = es[0]
    for s in range(1, S):
        denom = denom + es[s]
    inv = pl.reciprocal(denom, approx=True)                         # (B, 1)

    # weighted pooling: hunks[b] = sum_s softmax(s, b) * out_state[b, s, :]
    acc = jnp.zeros((B, H2), jnp.float32)
    for s in range(S):
        acc = acc + es[s] * out_all[s * B:(s + 1) * B, :]
    hunks_ref[...] = acc * inv


def _pack_gate_major(wT_f, wT_b, H):
    """(K, 3H) transposed per-direction weights -> (2K, 6H) block/gate-major.

    Columns: [r_f | r_b | z_f | z_b | n_f | n_b].  Rows 0:K act on the forward
    half of the packed operand, rows K:2K on the backward half (zeros cross-block),
    so a single matmul computes both directions' gate pre-activations.
    """
    K = wT_f.shape[0]
    zero = jnp.zeros((K, H), jnp.float32)
    rowf = jnp.concatenate([wT_f[:, 0:H], zero, wT_f[:, H:2 * H], zero,
                            wT_f[:, 2 * H:3 * H], zero], axis=1)
    rowb = jnp.concatenate([zero, wT_b[:, 0:H], zero, wT_b[:, H:2 * H],
                            zero, wT_b[:, 2 * H:3 * H]], axis=1)
    return jnp.concatenate([rowf, rowb], axis=0)


@jax.jit
def hunk_rnn_forward(inp, hid_state, params):
    """inp: (B, S, hunk_size), hid_state: (2, B, hidden)
       -> (hunks (B, 2H), hid (2, B, H)), matching the PyTorch module."""
    B, S, I = inp.shape
    H = hid_state.shape[-1]
    f32, bf16 = jnp.float32, jnp.bfloat16

    # Time-major input; row-block s of x_comb carries [x(s) | x(S-1-s)] so the
    # hoisted projection yields forward AND backward gate inputs per loop step.
    inp_t = jnp.transpose(inp, (1, 0, 2)).astype(f32)               # (S, B, I)
    x_comb = jnp.concatenate([inp_t, inp_t[::-1]], axis=-1)         # (S, B, 2I)
    x_comb = x_comb.reshape(S * B, 2 * I).astype(bf16)

    h0 = jnp.concatenate([hid_state[0], hid_state[1]], axis=-1).astype(f32)

    w_ih = _pack_gate_major(params["w_ih_f"].T.astype(f32),
                            params["w_ih_b"].T.astype(f32), H).astype(bf16)
    w_hh = _pack_gate_major(params["w_hh_f"].T.astype(f32),
                            params["w_hh_b"].T.astype(f32), H).astype(bf16)

    bif, bhf = params["b_ih_f"], params["b_hh_f"]
    bib, bhb = params["b_ih_b"], params["b_hh_b"]
    # r/z gates: b_ih + b_hh folded together; n gate: only b_ih (b_hh_n is gated by r).
    bias = jnp.concatenate([
        bif[0:H] + bhf[0:H],             bib[0:H] + bhb[0:H],            # r_f, r_b
        bif[H:2 * H] + bhf[H:2 * H],     bib[H:2 * H] + bhb[H:2 * H],    # z_f, z_b
        bif[2 * H:3 * H],                bib[2 * H:3 * H],               # n_f, n_b
    ])[None, :].astype(f32)                                              # (1, 6H)
    bhh_n = jnp.concatenate([bhf[2 * H:3 * H],
                             bhb[2 * H:3 * H]])[None, :].astype(f32)     # (1, 2H)

    args = (
        x_comb, h0, w_ih, w_hh, bias, bhh_n,
        params["attn_w"].T.astype(bf16),
        params["attn_b"][None, :].astype(f32),
        params["comb_w"].astype(f32),
    )

    vmem = pltpu.MemorySpace.VMEM
    hunks, hidcat = pl.pallas_call(
        functools.partial(_hunk_rnn_kernel, S, H),
        out_shape=(jax.ShapeDtypeStruct((B, 2 * H), jnp.float32),
                   jax.ShapeDtypeStruct((B, 2 * H), jnp.float32)),
        in_specs=[pl.BlockSpec(memory_space=vmem)] * len(args),
        out_specs=(pl.BlockSpec(memory_space=vmem),
                   pl.BlockSpec(memory_space=vmem)),
        scratch_shapes=[pltpu.VMEM((S * B, 2 * H), jnp.float32)],
        # TODO(synk): when many independent (B, S) hunks are batched, add a
        # leading "parallel" grid axis (pltpu.CompilerParams dimension_semantics)
        # so v7x uses both TensorCores, and re-budget VMEM against its 64 MiB.
    )(*args)

    hid_out = jnp.stack([hidcat[:, 0:H], hidcat[:, H:2 * H]], axis=0)    # (2, B, H)
    return hunks, hid_out


def init_params(key, hunk_size, hidden_size):
    H, I = hidden_size, hunk_size
    G = 2 * H
    bound = 1.0 / math.sqrt(H)
    ks = jax.random.split(key, 11)
    u = lambda k, shape: jax.random.uniform(k, shape, jnp.float32, -bound, bound)
    return dict(
        w_ih_f=u(ks[0], (3 * H, I)), w_hh_f=u(ks[1], (3 * H, H)),
        b_ih_f=u(ks[2], (3 * H,)), b_hh_f=u(ks[3], (3 * H,)),
        w_ih_b=u(ks[4], (3 * H, I)), w_hh_b=u(ks[5], (3 * H, H)),
        b_ih_b=u(ks[6], (3 * H,)), b_hh_b=u(ks[7], (3 * H,)),
        attn_w=u(ks[8], (G, G)), attn_b=u(ks[9], (G,)),
        comb_w=u(ks[10], (1, G)),
    )


def hunk_rnn_reference(inp, h0, p):
    """Pure-JAX (f32) reference mirroring the PyTorch forward, for verification."""
    B, S, I = inp.shape
    H = h0.shape[-1]

    def cell(h, x, wih, whh, bih, bhh):
        gi = x @ wih.T + bih
        gh = h @ whh.T + bhh
        r = jax.nn.sigmoid(gi[:, :H] + gh[:, :H])
        z = jax.nn.sigmoid(gi[:, H:2 * H] + gh[:, H:2 * H])
        n = jnp.tanh(gi[:, 2 * H:] + r * gh[:, 2 * H:])
        return (1 - z) * n + z * h

    xs = jnp.transpose(inp, (1, 0, 2))
    hf, out_f = lax.scan(
        lambda h, x: (lambda h2: (h2, h2))(
            cell(h, x, p["w_ih_f"], p["w_hh_f"], p["b_ih_f"], p["b_hh_f"])),
        h0[0], xs)
    hb, out_b_rev = lax.scan(
        lambda h, x: (lambda h2: (h2, h2))(
            cell(h, x, p["w_ih_b"], p["w_hh_b"], p["b_ih_b"], p["b_hh_b"])),
        h0[1], xs[::-1])
    out_b = out_b_rev[::-1]
    out = jnp.concatenate([out_f, out_b], axis=-1)            # (S, B, 2H)
    out = jnp.transpose(out, (1, 0, 2))                       # (B, S, 2H)
    ann = jax.nn.relu(out @ p["attn_w"].T + p["attn_b"])
    attn = jax.nn.softmax(ann @ p["comb_w"].T, axis=1)        # (B, S, 1)
    hunks = jnp.einsum("bsh,bsk->bh", out, attn)
    hid = jnp.stack([hf, hb], axis=0)
    return hunks, hid


if __name__ == "__main__":
    hunk_size, hidden_size = 16, 32
    batch, seq = 2, 8

    key = jax.random.PRNGKey(0)
    k_inp, k_hid, k_par = jax.random.split(key, 3)
    inp = jax.random.normal(k_inp, (batch, seq, hunk_size), jnp.float32)
    hid0 = jax.random.normal(k_hid, (2, batch, hidden_size), jnp.float32)
    params = init_params(k_par, hunk_size, hidden_size)

    hunks, hid = hunk_rnn_forward(inp, hid0, params)
    jax.block_until_ready((hunks, hid))

    ref_hunks, ref_hid = hunk_rnn_reference(inp, hid0, params)
    assert hunks.shape == (batch, 2 * hidden_size)
    assert hid.shape == (2, batch, hidden_size)
    # Tolerance accounts for bf16 matmul operands (f32 accumulation) vs. the
    # pure-f32 reference; any gate/direction mis-wiring would produce O(1) error.
    assert bool(jnp.allclose(hunks, ref_hunks, atol=3e-2, rtol=3e-2))
    assert bool(jnp.allclose(hid, ref_hid, atol=3e-2, rtol=3e-2))

    print("KERNEL_OK")
</pallas_src>

<mosaic_0001>
module attributes {stable_mosaic.version = 11 : i64} {
  func.func @_hunk_rnn_kernel(%arg0: memref<16x32xbf16, #tpu.memory_space<vmem>>, %arg1: memref<2x64xf32, #tpu.memory_space<vmem>>, %arg2: memref<32x192xbf16, #tpu.memory_space<vmem>>, %arg3: memref<64x192xbf16, #tpu.memory_space<vmem>>, %arg4: memref<1x192xf32, #tpu.memory_space<vmem>>, %arg5: memref<1x64xf32, #tpu.memory_space<vmem>>, %arg6: memref<64x64xbf16, #tpu.memory_space<vmem>>, %arg7: memref<1x64xf32, #tpu.memory_space<vmem>>, %arg8: memref<1x64xf32, #tpu.memory_space<vmem>>, %arg9: memref<2x64xf32, #tpu.memory_space<vmem>>, %arg10: memref<2x64xf32, #tpu.memory_space<vmem>>, %arg11: memref<16x64xf32, #tpu.memory_space<vmem>>) attributes {dimension_semantics = [], scalar_prefetch = 0 : i64, scratch_operands = 1 : i64, tpu.core_type = #tpu.core_type<tc>} {
    %c0 = arith.constant 0 : index
    %c0_0 = arith.constant 0 : index
    %0 = vector.load %arg0[%c0, %c0_0] : memref<16x32xbf16, #tpu.memory_space<vmem>>, vector<16x32xbf16>
    %c0_1 = arith.constant 0 : index
    %c0_2 = arith.constant 0 : index
    %1 = vector.load %arg2[%c0_1, %c0_2] : memref<32x192xbf16, #tpu.memory_space<vmem>>, vector<32x192xbf16>
    %cst = arith.constant dense<0.000000e+00> : vector<16x192xf32>
    %2 = tpu.matmul %0, %1, %cst {dimension_numbers = #tpu.dot_dimension_numbers<[1], [0], [0], [1], [0, 0, 1, 1], [], []>} : vector<16x32xbf16>, vector<32x192xbf16>, vector<16x192xf32> -> vector<16x192xf32>
    %c0_3 = arith.constant 0 : index
    %c0_4 = arith.constant 0 : index
    %3 = vector.load %arg4[%c0_3, %c0_4] : memref<1x192xf32, #tpu.memory_space<vmem>>, vector<1x192xf32>
    %4 = vector.broadcast %3 : vector<1x192xf32> to vector<16x192xf32>
    %5 = arith.addf %2, %4 : vector<16x192xf32>
    %c0_5 = arith.constant 0 : index
    %c0_6 = arith.constant 0 : index
    %6 = vector.load %arg3[%c0_5, %c0_6] : memref<64x192xbf16, #tpu.memory_space<vmem>>, vector<64x192xbf16>
    %c0_7 = arith.constant 0 : index
    %c0_8 = arith.constant 0 : index
    %7 = vector.load %arg5[%c0_7, %c0_8] : memref<1x64xf32, #tpu.memory_space<vmem>>, vector<1x64xf32>
    %8 = vector.shape_cast %7 : vector<1x64xf32> to vector<1x64xf32>
    %9 = vector.broadcast %8 : vector<1x64xf32> to vector<2x64xf32>
    %c0_9 = arith.constant 0 : index
    %c0_10 = arith.constant 0 : index
    %10 = vector.load %arg1[%c0_9, %c0_10] : memref<2x64xf32, #tpu.memory_space<vmem>>, vector<2x64xf32>
    %11 = vector.extract_strided_slice %5 {offsets = [0, 0], sizes = [2, 192], strides = [1, 1]} : vector<16x192xf32> to vector<2x192xf32>
    %12 = arith.truncf %10 : vector<2x64xf32> to vector<2x64xbf16>
    %cst_11 = arith.constant dense<0.000000e+00> : vector<2x192xf32>
    %13 = tpu.matmul %12, %6, %cst_11 {dimension_numbers = #tpu.dot_dimension_numbers<[1], [0], [0], [1], [0, 0, 1, 1], [], []>} : vector<2x64xbf16>, vector<64x192xbf16>, vector<2x192xf32> -> vector<2x192xf32>
    %14 = vector.extract_strided_slice %11 {offsets = [0, 0], sizes = [2, 128], strides = [1, 1]} : vector<2x192xf32> to vector<2x128xf32>
    %15 = vector.extract_strided_slice %13 {offsets = [0, 0], sizes = [2, 128], strides = [1, 1]} : vector<2x192xf32> to vector<2x128xf32>
    %16 = arith.addf %14, %15 : vector<2x128xf32>
    %17 = arith.negf %16 : vector<2x128xf32>
    %18 = math.exp %17 : vector<2x128xf32>
    %cst_12 = arith.constant 1.000000e+00 : f32
    %19 = vector.broadcast %cst_12 : f32 to vector<2x128xf32>
    %20 = arith.addf %19, %18 : vector<2x128xf32>
    %21 = arith.divf %19, %20 : vector<2x128xf32>
    %22 = vector.extract_strided_slice %21 {offsets = [0, 0], sizes = [2, 64], strides = [1, 1]} : vector<2x128xf32> to vector<2x64xf32>
    %23 = vector.extract_strided_slice %21 {offsets = [0, 64], sizes = [2, 64], strides = [1, 1]} : vector<2x128xf32> to vector<2x64xf32>
    %24 = vector.extract_strided_slice %11 {offsets = [0, 128], sizes = [2, 64], strides = [1, 1]} : vector<2x192xf32> to vector<2x64xf32>
    %25 = vector.extract_strided_slice %13 {offsets = [0, 128], sizes = [2, 64], strides = [1, 1]} : vector<2x192xf32> to vector<2x64xf32>
    %26 = arith.addf %25, %9 : vector<2x64xf32>
    %27 = arith.mulf %22, %26 : vector<2x64xf32>
    %28 = arith.addf %24, %27 : vector<2x64xf32>
    %29 = math.tanh %28 : vector<2x64xf32>
    %cst_13 = arith.constant 1.000000e+00 : f32
    %30 = vector.broadcast %cst_13 : f32 to vector<2x64xf32>
    %31 = arith.subf %30, %23 : vector<2x64xf32>
    %32 = arith.mulf %31, %29 : vector<2x64xf32>
    %33 = arith.mulf %23, %10 : vector<2x64xf32>
    %34 = arith.addf %32, %33 : vector<2x64xf32>
    %35 = vector.extract_strided_slice %34 {offsets = [0, 0], sizes = [2, 32], strides = [1, 1]} : vector<2x64xf32> to vector<2x32xf32>
    %c0_14 = arith.constant 0 : index
    %c0_15 = arith.constant 0 : index
    %36 = vector.load %arg11[%c0_14, %c0_15] : memref<16x64xf32, #tpu.memory_space<vmem>>, vector<2x32xf32>
    tpu.vector_store %arg11[%c0_14, %c0_15], %35 {strides = array<i32>} : memref<16x64xf32, #tpu.memory_space<vmem>>, vector<2x32xf32>,
    %37 = vector.extract_strided_slice %34 {offsets = [0, 32], sizes = [2, 32], strides = [1, 1]} : vector<2x64xf32> to vector<2x32xf32>
    %c14 = arith.constant 14 : index
    %c32 = arith.constant 32 : index
    %38 = vector.load %arg11[%c14, %c32] : memref<16x64xf32, #tpu.memory_space<vmem>>, vector<2x32xf32>
    tpu.vector_store %arg11[%c14, %c32], %37 {strides = array<i32>} : memref<16x64xf32, #tpu.memory_space<vmem>>, vector<2x32xf32>,
    %39 = vector.extract_strided_slice %5 {offsets = [2, 0], sizes = [2, 192], strides = [1, 1]} : vector<16x192xf32> to vector<2x192xf32>
    %40 = arith.truncf %34 : vector<2x64xf32> to vector<2x64xbf16>
    %cst_16 = arith.constant dense<0.000000e+00> : vector<2x192xf32>
    %41 = tpu.matmul %40, %6, %cst_16 {dimension_numbers = #tpu.dot_dimension_numbers<[1], [0], [0], [1], [0, 0, 1, 1], [], []>} : vector<2x64xbf16>, vector<64x192xbf16>, vector<2x192xf32> -> vector<2x192xf32>
    %42 = vector.extract_strided_slice %39 {offsets = [0, 0], sizes = [2, 128], strides = [1, 1]} : vector<2x192xf32> to vector<2x128xf32>
    %43 = vector.extract_strided_slice %41 {offsets = [0, 0], sizes = [2, 128], strides = [1, 1]} : vector<2x192xf32> to vector<2x128xf32>
    %44 = arith.addf %42, %43 : vector<2x128xf32>
    %45 = arith.negf %44 : vector<2x128xf32>
    %46 = math.exp %45 : vector<2x128xf32>
    %cst_17 = arith.constant 1.000000e+00 : f32
    %47 = vector.broadcast %cst_17 : f32 to vector<2x128xf32>
    %48 = arith.addf %47, %46 : vector<2x128xf32>
    %49 = arith.divf %47, %48 : vector<2x128xf32>
    %50 = vector.extract_strided_slice %49 {offsets = [0, 0], sizes = [2, 64], strides = [1, 1]} : vector<2x128xf32> to vector<2x64xf32>
    %51 = vector.extract_strided_slice %49 {offsets = [0, 64], sizes = [2, 64], strides = [1, 1]} : vector<2x128xf32> to vector<2x64xf32>
    %52 = vector.extract_strided_slice %39 {offsets = [0, 128], sizes = [2, 64], strides = [1, 1]} : vector<2x192xf32> to vector<2x64xf32>
    %53 = vector.extract_strided_slice %41 {offsets = [0, 128], sizes = [2, 64], strides = [1, 1]} : vector<2x192xf32> to vector<2x64xf32>
    %54 = arith.addf %53, %9 : vector<2x64xf32>
    %55 = arith.mulf %50, %54 : vector<2x64xf32>
    %56 = arith.addf %52, %55 : vector<2x64xf32>
    %57 = math.tanh %56 : vector<2x64xf32>
    %cst_18 = arith.constant 1.000000e+00 : f32
    %58 = vector.broadcast %cst_18 : f32 to vector<2x64xf32>
    %59 = arith.subf %58, %51 : vector<2x64xf32>
    %60 = arith.mulf %59, %57 : vector<2x64xf32>
    %61 = arith.mulf %51, %34 : vector<2x64xf32>
    %62 = arith.addf %60, %61 : vector<2x64xf32>
    %63 = vector.extract_strided_slice %62 {offsets = [0, 0], sizes = [2, 32], strides = [1, 1]} : vector<2x64xf32> to vector<2x32xf32>
    %c2 = arith.constant 2 : index
    %c0_19 = arith.constant 0 : index
    %64 = vector.load %arg11[%c2, %c0_19] : memref<16x64xf32, #tpu.memory_space<vmem>>, vector<2x32xf32>
    tpu.vector_store %arg11[%c2, %c0_19], %63 {strides = array<i32>} : memref<16x64xf32, #tpu.memory_space<vmem>>, vector<2x32xf32>,
    %65 = vector.extract_strided_slice %62 {offsets = [0, 32], sizes = [2, 32], strides = [1, 1]} : vector<2x64xf32> to vector<2x32xf32>
    %c12 = arith.constant 12 : index
    %c32_20 = arith.constant 32 : index
    %66 = vector.load %arg11[%c12, %c32_20] : memref<16x64xf32, #tpu.memory_space<vmem>>, vector<2x32xf32>
    tpu.vector_store %arg11[%c12, %c32_20], %65 {strides = array<i32>} : memref<16x64xf32, #tpu.memory_space<vmem>>, vector<2x32xf32>,
    %67 = vector.extract_strided_slice %5 {offsets = [4, 0], sizes = [2, 192], strides = [1, 1]} : vector<16x192xf32> to vector<2x192xf32>
    %68 = arith.truncf %62 : vector<2x64xf32> to vector<2x64xbf16>
    %cst_21 = arith.constant dense<0.000000e+00> : vector<2x192xf32>
    %69 = tpu.matmul %68, %6, %cst_21 {dimension_numbers = #tpu.dot_dimension_numbers<[1], [0], [0], [1], [0, 0, 1, 1], [], []>} : vector<2x64xbf16>, vector<64x192xbf16>, vector<2x192xf32> -> vector<2x192xf32>
    %70 = vector.extract_strided_slice %67 {offsets = [0, 0], sizes = [2, 128], strides = [1, 1]} : vector<2x192xf32> to vector<2x128xf32>
    %71 = vector.extract_strided_slice %69 {offsets = [0, 0], sizes = [2, 128], strides = [1, 1]} : vector<2x192xf32> to vector<2x128xf32>
    %72 = arith.addf %70, %71 : vector<2x128xf32>
    %73 = arith.negf %72 : vector<2x128xf32>
    %74 = math.exp %73 : vector<2x128xf32>
    %cst_22 = arith.constant 1.000000e+00 : f32
    %75 = vector.broadcast %cst_22 : f32 to vector<2x128xf32>
    %76 = arith.addf %75, %74 : vector<2x128xf32>
    %77 = arith.divf %75, %76 : vector<2x128xf32>
    %78 = vector.extract_strided_slice %77 {offsets = [0, 0], sizes = [2, 64], strides = [1, 1]} : vector<2x128xf32> to vector<2x64xf32>
    %79 = vector.extract_strided_slice %77 {offsets = [0, 64], sizes = [2, 64], strides = [1, 1]} : vector<2x128xf32> to vector<2x64xf32>
    %80 = vector.extract_strided_slice %67 {offsets = [0, 128], sizes = [2, 64], strides = [1, 1]} : vector<2x192xf32> to vector<2x64xf32>
    %81 = vector.extract_strided_slice %69 {offsets = [0, 128], sizes = [2, 64], strides = [1, 1]} : vector<2x192xf32> to vector<2x64xf32>
    %82 = arith.addf %81, %9 : vector<2x64xf32>
    %83 = arith.mulf %78, %82 : vector<2x64xf32>
    %84 = arith.addf %80, %83 : vector<2x64xf32>
    %85 = math.tanh %84 : vector<2x64xf32>
    %cst_23 = arith.constant 1.000000e+00 : f32
    %86 = vector.broadcast %cst_23 : f32 to vector<2x64xf32>
    %87 = arith.subf %86, %79 : vector<2x64xf32>
    %88 = arith.mulf %87, %85 : vector<2x64xf32>
    %89 = arith.mulf %79, %62 : vector<2x64xf32>
    %90 = arith.addf %88, %89 : vector<2x64xf32>
    %91 = vector.extract_strided_slice %90 {offsets = [0, 0], sizes = [2, 32], strides = [1, 1]} : vector<2x64xf32> to vector<2x32xf32>
    %c4 = arith.constant 4 : index
    %c0_24 = arith.constant 0 : index
    %92 = vector.load %arg11[%c4, %c0_24] : memref<16x64xf32, #tpu.memory_space<vmem>>, vector<2x32xf32>
    tpu.vector_store %arg11[%c4, %c0_24], %91 {strides = array<i32>} : memref<16x64xf32, #tpu.memory_space<vmem>>, vector<2x32xf32>,
    %93 = vector.extract_strided_slice %90 {offsets = [0, 32], sizes = [2, 32], strides = [1, 1]} : vector<2x64xf32> to vector<2x32xf32>
    %c10 = arith.constant 10 : index
    %c32_25 = arith.constant 32 : index
    %94 = vector.load %arg11[%c10, %c32_25] : memref<16x64xf32, #tpu.memory_space<vmem>>, vector<2x32xf32>
    tpu.vector_store %arg11[%c10, %c32_25], %93 {strides = array<i32>} : memref<16x64xf32, #tpu.memory_space<vmem>>, vector<2x32xf32>,
    %95 = vector.extract_strided_slice %5 {offsets = [6, 0], sizes = [2, 192], strides = [1, 1]} : vector<16x192xf32> to vector<2x192xf32>
    %96 = arith.truncf %90 : vector<2x64xf32> to vector<2x64xbf16>
    %cst_26 = arith.constant dense<0.000000e+00> : vector<2x192xf32>
    %97 = tpu.matmul %96, %6, %cst_26 {dimension_numbers = #tpu.dot_dimension_numbers<[1], [0], [0], [1], [0, 0, 1, 1], [], []>} : vector<2x64xbf16>, vector<64x192xbf16>, vector<2x192xf32> -> vector<2x192xf32>
    %98 = vector.extract_strided_slice %95 {offsets = [0, 0], sizes = [2, 128], strides = [1, 1]} : vector<2x192xf32> to vector<2x128xf32>
    %99 = vector.extract_strided_slice %97 {offsets = [0, 0], sizes = [2, 128], strides = [1, 1]} : vector<2x192xf32> to vector<2x128xf32>
    %100 = arith.addf %98, %99 : vector<2x128xf32>
    %101 = arith.negf %100 : vector<2x128xf32>
    %102 = math.exp %101 : vector<2x128xf32>
    %cst_27 = arith.constant 1.000000e+00 : f32
    %103 = vector.broadcast %cst_27 : f32 to vector<2x128xf32>
    %104 = arith.addf %103, %102 : vector<2x128xf32>
    %105 = arith.divf %103, %104 : vector<2x128xf32>
    %106 = vector.extract_strided_slice %105 {offsets = [0, 0], sizes = [2, 64], strides = [1, 1]} : vector<2x128xf32> to vector<2x64xf32>
    %107 = vector.extract_strided_slice %105 {offsets = [0, 64], sizes = [2, 64], strides = [1, 1]} : vector<2x128xf32> to vector<2x64xf32>
    %108 = vector.extract_strided_slice %95 {offsets = [0, 128], sizes = [2, 64], strides = [1, 1]} : vector<2x192xf32> to vector<2x64xf32>
    %109 = vector.extract_strided_slice %97 {offsets = [0, 128], sizes = [2, 64], strides = [1, 1]} : vector<2x192xf32> to vector<2x64xf32>
    %110 = arith.addf %109, %9 : vector<2x64xf32>
    %111 = arith.mulf %106, %110 : vector<2x64xf32>
    %112 = arith.addf %108, %111 : vector<2x64xf32>
    %113 = math.tanh %112 : vector<2x64xf32>
    %cst_28 = arith.constant 1.000000e+00 : f32
    %114 = vector.broadcast %cst_28 : f32 to vector<2x64xf32>
    %115 = arith.subf %114, %107 : vector<2x64xf32>
    %116 = arith.mulf %115, %113 : vector<2x64xf32>
    %117 = arith.mulf %107, %90 : vector<2x64xf32>
    %118 = arith.addf %116, %117 : vector<2x64xf32>
    %119 = vector.extract_strided_slice %118 {offsets = [0, 0], sizes = [2, 32], strides = [1, 1]} : vector<2x64xf32> to vector<2x32xf32>
    %c6 = arith.constant 6 : index
    %c0_29 = arith.constant 0 : index
    %120 = vector.load %arg11[%c6, %c0_29] : memref<16x64xf32, #tpu.memory_space<vmem>>, vector<2x32xf32>
    tpu.vector_store %arg11[%c6, %c0_29], %119 {strides = array<i32>} : memref<16x64xf32, #tpu.memory_space<vmem>>, vector<2x32xf32>,
    %121 = vector.extract_strided_slice %118 {offsets = [0, 32], sizes = [2, 32], strides = [1, 1]} : vector<2x64xf32> to vector<2x32xf32>
    %c8 = arith.constant 8 : index
    %c32_30 = arith.constant 32 : index
    %122 = vector.load %arg11[%c8, %c32_30] : memref<16x64xf32, #tpu.memory_space<vmem>>, vector<2x32xf32>
    tpu.vector_store %arg11[%c8, %c32_30], %121 {strides = array<i32>} : memref<16x64xf32, #tpu.memory_space<vmem>>, vector<2x32xf32>,
    %123 = vector.extract_strided_slice %5 {offsets = [8, 0], sizes = [2, 192], strides = [1, 1]} : vector<16x192xf32> to vector<2x192xf32>
    %124 = arith.truncf %118 : vector<2x64xf32> to vector<2x64xbf16>
    %cst_31 = arith.constant dense<0.000000e+00> : vector<2x192xf32>
    %125 = tpu.matmul %124, %6, %cst_31 {dimension_numbers = #tpu.dot_dimension_numbers<[1], [0], [0], [1], [0, 0, 1, 1], [], []>} : vector<2x64xbf16>, vector<64x192xbf16>, vector<2x192xf32> -> vector<2x192xf32>
    %126 = vector.extract_strided_slice %123 {offsets = [0, 0], sizes = [2, 128], strides = [1, 1]} : vector<2x192xf32> to vector<2x128xf32>
    %127 = vector.extract_strided_slice %125 {offsets = [0, 0], sizes = [2, 128], strides = [1, 1]} : vector<2x192xf32> to vector<2x128xf32>
    %128 = arith.addf %126, %127 : vector<2x128xf32>
    %129 = arith.negf %128 : vector<2x128xf32>
    %130 = math.exp %129 : vector<2x128xf32>
    %cst_32 = arith.constant 1.000000e+00 : f32
    %131 = vector.broadcast %cst_32 : f32 to vector<2x128xf32>
    %132 = arith.addf %131, %130 : vector<2x128xf32>
    %133 = arith.divf %131, %132 : vector<2x128xf32>
    %134 = vector.extract_strided_slice %133 {offsets = [0, 0], sizes = [2, 64], strides = [1, 1]} : vector<2x128xf32> to vector<2x64xf32>
    %135 = vector.extract_strided_slice %133 {offsets = [0, 64], sizes = [2, 64], strides = [1, 1]} : vector<2x128xf32> to vector<2x64xf32>
    %136 = vector.extract_strided_slice %123 {offsets = [0, 128], sizes = [2, 64], strides = [1, 1]} : vector<2x192xf32> to vector<2x64xf32>
    %137 = vector.extract_strided_slice %125 {offsets = [0, 128], sizes = [2, 64], strides = [1, 1]} : vector<2x192xf32> to vector<2x64xf32>
    %138 = arith.addf %137, %9 : vector<2x64xf32>
    %139 = arith.mulf %134, %138 : vector<2x64xf32>
    %140 = arith.addf %136, %139 : vector<2x64xf32>
    %141 = math.tanh %140 : vector<2x64xf32>
    %cst_33 = arith.constant 1.000000e+00 : f32
    %142 = vector.broadcast %cst_33 : f32 to vector<2x64xf32>
    %143 = arith.subf %142, %135 : vector<2x64xf32>
    %144 = arith.mulf %143, %141 : vector<2x64xf32>
    %145 = arith.mulf %135, %118 : vector<2x64xf32>
    %146 = arith.addf %144, %145 : vector<2x64xf32>
    %147 = vector.extract_strided_slice %146 {offsets = [0, 0], sizes = [2, 32], strides = [1, 1]} : vector<2x64xf32> to vector<2x32xf32>
    %c8_34 = arith.constant 8 : index
    %c0_35 = arith.constant 0 : index
    %148 = vector.load %arg11[%c8_34, %c0_35] : memref<16x64xf32, #tpu.memory_space<vmem>>, vector<2x32xf32>
    tpu.vector_store %arg11[%c8_34, %c0_35], %147 {strides = array<i32>} : memref<16x64xf32, #tpu.memory_space<vmem>>, vector<2x32xf32>,
    %149 = vector.extract_strided_slice %146 {offsets = [0, 32], sizes = [2, 32], strides = [1, 1]} : vector<2x64xf32> to vector<2x32xf32>
    %c6_36 = arith.constant 6 : index
    %c32_37 = arith.constant 32 : index
    %150 = vector.load %arg11[%c6_36, %c32_37] : memref<16x64xf32, #tpu.memory_space<vmem>>, vector<2x32xf32>
    tpu.vector_store %arg11[%c6_36, %c32_37], %149 {strides = array<i32>} : memref<16x64xf32, #tpu.memory_space<vmem>>, vector<2x32xf32>,
    %151 = vector.extract_strided_slice %5 {offsets = [10, 0], sizes = [2, 192], strides = [1, 1]} : vector<16x192xf32> to vector<2x192xf32>
    %152 = arith.truncf %146 : vector<2x64xf32> to vector<2x64xbf16>
    %cst_38 = arith.constant dense<0.000000e+00> : vector<2x192xf32>
    %153 = tpu.matmul %152, %6, %cst_38 {dimension_numbers = #tpu.dot_dimension_numbers<[1], [0], [0], [1], [0, 0, 1, 1], [], []>} : vector<2x64xbf16>, vector<64x192xbf16>, vector<2x192xf32> -> vector<2x192xf32>
    %154 = vector.extract_strided_slice %151 {offsets = [0, 0], sizes = [2, 128], strides = [1, 1]} : vector<2x192xf32> to vector<2x128xf32>
    %155 = vector.extract_strided_slice %153 {offsets = [0, 0], sizes = [2, 128], strides = [1, 1]} : vector<2x192xf32> to vector<2x128xf32>
    %156 = arith.addf %154, %155 : vector<2x128xf32>
    %157 = arith.negf %156 : vector<2x128xf32>
    %158 = math.exp %157 : vector<2x128xf32>
    %cst_39 = arith.constant 1.000000e+00 : f32
    %159 = vector.broadcast %cst_39 : f32 to vector<2x128xf32>
    %160 = arith.addf %159, %158 : vector<2x128xf32>
    %161 = arith.divf %159, %160 : vector<2x128xf32>
    %162 = vector.extract_strided_slice %161 {offsets = [0, 0], sizes = [2, 64], strides = [1, 1]} : vector<2x128xf32> to vector<2x64xf32>
    %163 = vector.extract_strided_slice %161 {offsets = [0, 64], sizes = [2, 64], strides = [1, 1]} : vector<2x128xf32> to vector<2x64xf32>
    %164 = vector.extract_strided_slice %151 {offsets = [0, 128], sizes = [2, 64], strides = [1, 1]} : vector<2x192xf32> to vector<2x64xf32>
    %165 = vector.extract_strided_slice %153 {offsets = [0, 128], sizes = [2, 64], strides = [1, 1]} : vector<2x192xf32> to vector<2x64xf32>
    %166 = arith.addf %165, %9 : vector<2x64xf32>
    %167 = arith.mulf %162, %166 : vector<2x64xf32>
    %168 = arith.addf %164, %167 : vector<2x64xf32>
    %169 = math.tanh %168 : vector<2x64xf32>
    %cst_40 = arith.constant 1.000000e+00 : f32
    %170 = vector.broadcast %cst_40 : f32 to vector<2x64xf32>
    %171 = arith.subf %170, %163 : vector<2x64xf32>
    %172 = arith.mulf %171, %169 : vector<2x64xf32>
    %173 = arith.mulf %163, %146 : vector<2x64xf32>
    %174 = arith.addf %172, %173 : vector<2x64xf32>
    %175 = vector.extract_strided_slice %174 {offsets = [0, 0], sizes = [2, 32], strides = [1, 1]} : vector<2x64xf32> to vector<2x32xf32>
    %c10_41 = arith.constant 10 : index
    %c0_42 = arith.constant 0 : index
    %176 = vector.load %arg11[%c10_41, %c0_42] : memref<16x64xf32, #tpu.memory_space<vmem>>, vector<2x32xf32>
    tpu.vector_store %arg11[%c10_41, %c0_42], %175 {strides = array<i32>} : memref<16x64xf32, #tpu.memory_space<vmem>>, vector<2x32xf32>,
    %177 = vector.extract_strided_slice %174 {offsets = [0, 32], sizes = [2, 32], strides = [1, 1]} : vector<2x64xf32> to vector<2x32xf32>
    %c4_43 = arith.constant 4 : index
    %c32_44 = arith.constant 32 : index
    %178 = vector.load %arg11[%c4_43, %c32_44] : memref<16x64xf32, #tpu.memory_space<vmem>>, vector<2x32xf32>
    tpu.vector_store %arg11[%c4_43, %c32_44], %177 {strides = array<i32>} : memref<16x64xf32, #tpu.memory_space<vmem>>, vector<2x32xf32>,
    %179 = vector.extract_strided_slice %5 {offsets = [12, 0], sizes = [2, 192], strides = [1, 1]} : vector<16x192xf32> to vector<2x192xf32>
    %180 = arith.truncf %174 : vector<2x64xf32> to vector<2x64xbf16>
    %cst_45 = arith.constant dense<0.000000e+00> : vector<2x192xf32>
    %181 = tpu.matmul %180, %6, %cst_45 {dimension_numbers = #tpu.dot_dimension_numbers<[1], [0], [0], [1], [0, 0, 1, 1], [], []>} : vector<2x64xbf16>, vector<64x192xbf16>, vector<2x192xf32> -> vector<2x192xf32>
    %182 = vector.extract_strided_slice %179 {offsets = [0, 0], sizes = [2, 128], strides = [1, 1]} : vector<2x192xf32> to vector<2x128xf32>
    %183 = vector.extract_strided_slice %181 {offsets = [0, 0], sizes = [2, 128], strides = [1, 1]} : vector<2x192xf32> to vector<2x128xf32>
    %184 = arith.addf %182, %183 : vector<2x128xf32>
    %185 = arith.negf %184 : vector<2x128xf32>
    %186 = math.exp %185 : vector<2x128xf32>
    %cst_46 = arith.constant 1.000000e+00 : f32
    %187 = vector.broadcast %cst_46 : f32 to vector<2x128xf32>
    %188 = arith.addf %187, %186 : vector<2x128xf32>
    %189 = arith.divf %187, %188 : vector<2x128xf32>
    %190 = vector.extract_strided_slice %189 {offsets = [0, 0], sizes = [2, 64], strides = [1, 1]} : vector<2x128xf32> to vector<2x64xf32>
    %191 = vector.extract_strided_slice %189 {offsets = [0, 64], sizes = [2, 64], strides = [1, 1]} : vector<2x128xf32> to vector<2x64xf32>
    %192 = vector.extract_strided_slice %179 {offsets = [0, 128], sizes = [2, 64], strides = [1, 1]} : vector<2x192xf32> to vector<2x64xf32>
    %193 = vector.extract_strided_slice %181 {offsets = [0, 128], sizes = [2, 64], strides = [1, 1]} : vector<2x192xf32> to vector<2x64xf32>
    %194 = arith.addf %193, %9 : vector<2x64xf32>
    %195 = arith.mulf %190, %194 : vector<2x64xf32>
    %196 = arith.addf %192, %195 : vector<2x64xf32>
    %197 = math.tanh %196 : vector<2x64xf32>
    %cst_47 = arith.constant 1.000000e+00 : f32
    %198 = vector.broadcast %cst_47 : f32 to vector<2x64xf32>
    %199 = arith.subf %198, %191 : vector<2x64xf32>
    %200 = arith.mulf %199, %197 : vector<2x64xf32>
    %201 = arith.mulf %191, %174 : vector<2x64xf32>
    %202 = arith.addf %200, %201 : vector<2x64xf32>
    %203 = vector.extract_strided_slice %202 {offsets = [0, 0], sizes = [2, 32], strides = [1, 1]} : vector<2x64xf32> to vector<2x32xf32>
    %c12_48 = arith.constant 12 : index
    %c0_49 = arith.constant 0 : index
    %204 = vector.load %arg11[%c12_48, %c0_49] : memref<16x64xf32, #tpu.memory_space<vmem>>, vector<2x32xf32>
    tpu.vector_store %arg11[%c12_48, %c0_49], %203 {strides = array<i32>} : memref<16x64xf32, #tpu.memory_space<vmem>>, vector<2x32xf32>,
    %205 = vector.extract_strided_slice %202 {offsets = [0, 32], sizes = [2, 32], strides = [1, 1]} : vector<2x64xf32> to vector<2x32xf32>
    %c2_50 = arith.constant 2 : index
    %c32_51 = arith.constant 32 : index
    %206 = vector.load %arg11[%c2_50, %c32_51] : memref<16x64xf32, #tpu.memory_space<vmem>>, vector<2x32xf32>
    tpu.vector_store %arg11[%c2_50, %c32_51], %205 {strides = array<i32>} : memref<16x64xf32, #tpu.memory_space<vmem>>, vector<2x32xf32>,
    %207 = vector.extract_strided_slice %5 {offsets = [14, 0], sizes = [2, 192], strides = [1, 1]} : vector<16x192xf32> to vector<2x192xf32>
    %208 = arith.truncf %202 : vector<2x64xf32> to vector<2x64xbf16>
    %cst_52 = arith.constant dense<0.000000e+00> : vector<2x192xf32>
    %209 = tpu.matmul %208, %6, %cst_52 {dimension_numbers = #tpu.dot_dimension_numbers<[1], [0], [0], [1], [0, 0, 1, 1], [], []>} : vector<2x64xbf16>, vector<64x192xbf16>, vector<2x192xf32> -> vector<2x192xf32>
    %210 = vector.extract_strided_slice %207 {offsets = [0, 0], sizes = [2, 128], strides = [1, 1]} : vector<2x192xf32> to vector<2x128xf32>
    %211 = vector.extract_strided_slice %209 {offsets = [0, 0], sizes = [2, 128], strides = [1, 1]} : vector<2x192xf32> to vector<2x128xf32>
    %212 = arith.addf %210, %211 : vector<2x128xf32>
    %213 = arith.negf %212 : vector<2x128xf32>
    %214 = math.exp %213 : vector<2x128xf32>
    %cst_53 = arith.constant 1.000000e+00 : f32
    %215 = vector.broadcast %cst_53 : f32 to vector<2x128xf32>
    %216 = arith.addf %215, %214 : vector<2x128xf32>
    %217 = arith.divf %215, %216 : vector<2x128xf32>
    %218 = vector.extract_strided_slice %217 {offsets = [0, 0], sizes = [2, 64], strides = [1, 1]} : vector<2x128xf32> to vector<2x64xf32>
    %219 = vector.extract_strided_slice %217 {offsets = [0, 64], sizes = [2, 64], strides = [1, 1]} : vector<2x128xf32> to vector<2x64xf32>
    %220 = vector.extract_strided_slice %207 {offsets = [0, 128], sizes = [2, 64], strides = [1, 1]} : vector<2x192xf32> to vector<2x64xf32>
    %221 = vector.extract_strided_slice %209 {offsets = [0, 128], sizes = [2, 64], strides = [1, 1]} : vector<2x192xf32> to vector<2x64xf32>
    %222 = arith.addf %221, %9 : vector<2x64xf32>
    %223 = arith.mulf %218, %222 : vector<2x64xf32>
    %224 = arith.addf %220, %223 : vector<2x64xf32>
    %225 = math.tanh %224 : vector<2x64xf32>
    %cst_54 = arith.constant 1.000000e+00 : f32
    %226 = vector.broadcast %cst_54 : f32 to vector<2x64xf32>
    %227 = arith.subf %226, %219 : vector<2x64xf32>
    %228 = arith.mulf %227, %225 : vector<2x64xf32>
    %229 = arith.mulf %219, %202 : vector<2x64xf32>
    %230 = arith.addf %228, %229 : vector<2x64xf32>
    %231 = vector.extract_strided_slice %230 {offsets = [0, 0], sizes = [2, 32], strides = [1, 1]} : vector<2x64xf32> to vector<2x32xf32>
    %c14_55 = arith.constant 14 : index
    %c0_56 = arith.constant 0 : index
    %232 = vector.load %arg11[%c14_55, %c0_56] : memref<16x64xf32, #tpu.memory_space<vmem>>, vector<2x32xf32>
    tpu.vector_store %arg11[%c14_55, %c0_56], %231 {strides = array<i32>} : memref<16x64xf32, #tpu.memory_space<vmem>>, vector<2x32xf32>,
    %233 = vector.extract_strided_slice %230 {offsets = [0, 32], sizes = [2, 32], strides = [1, 1]} : vector<2x64xf32> to vector<2x32xf32>
    %c0_57 = arith.constant 0 : index
    %c32_58 = arith.constant 32 : index
    %234 = vector.load %arg11[%c0_57, %c32_58] : memref<16x64xf32, #tpu.memory_space<vmem>>, vector<2x32xf32>
    tpu.vector_store %arg11[%c0_57, %c32_58], %233 {strides = array<i32>} : memref<16x64xf32, #tpu.memory_space<vmem>>, vector<2x32xf32>,
    %c0_59 = arith.constant 0 : index
    %c0_60 = arith.constant 0 : index
    %235 = vector.load %arg10[%c0_59, %c0_60] : memref<2x64xf32, #tpu.memory_space<vmem>>, vector<2x64xf32>
    tpu.vector_store %arg10[%c0_59, %c0_60], %230 {strides = array<i32>} : memref<2x64xf32, #tpu.memory_space<vmem>>, vector<2x64xf32>,
    %c0_61 = arith.constant 0 : index
    %c0_62 = arith.constant 0 : index
    %236 = vector.load %arg11[%c0_61, %c0_62] : memref<16x64xf32, #tpu.memory_space<vmem>>, vector<16x64xf32>
    %237 = arith.truncf %236 : vector<16x64xf32> to vector<16x64xbf16>
    %c0_63 = arith.constant 0 : index
    %c0_64 = arith.constant 0 : index
    %238 = vector.load %arg6[%c0_63, %c0_64] : memref<64x64xbf16, #tpu.memory_space<vmem>>, vector<64x64xbf16>
    %cst_65 = arith.constant dense<0.000000e+00> : vector<16x64xf32>
    %239 = tpu.matmul %237, %238, %cst_65 {dimension_numbers = #tpu.dot_dimension_numbers<[1], [0], [0], [1], [0, 0, 1, 1], [], []>} : vector<16x64xbf16>, vector<64x64xbf16>, vector<16x64xf32> -> vector<16x64xf32>
    %c0_66 = arith.constant 0 : index
    %c0_67 = arith.constant 0 : index
    %240 = vector.load %arg7[%c0_66, %c0_67] : memref<1x64xf32, #tpu.memory_space<vmem>>, vector<1x64xf32>
    %241 = vector.broadcast %240 : vector<1x64xf32> to vector<16x64xf32>
    %242 = arith.addf %239, %241 : vector<16x64xf32>
    %cst_68 = arith.constant 0.000000e+00 : f32
    %243 = vector.broadcast %cst_68 : f32 to vector<16x64xf32>
    %244 = arith.maximumf %242, %243 : vector<16x64xf32>
    %c0_69 = arith.constant 0 : index
    %c0_70 = arith.constant 0 : index
    %245 = vector.load %arg8[%c0_69, %c0_70] : memref<1x64xf32, #tpu.memory_space<vmem>>, vector<1x64xf32>
    %246 = vector.broadcast %245 : vector<1x64xf32> to vector<16x64xf32>
    %247 = arith.mulf %244, %246 : vector<16x64xf32>
    %cst_71 = arith.constant dense<0.000000e+00> : vector<16xf32>
    %248 = vector.multi_reduction <add>, %247, %cst_71 [1] : vector<16x64xf32> to vector<16xf32>
    %249 = vector.shape_cast %248 : vector<16xf32> to vector<16x1xf32>
    %250 = vector.extract_strided_slice %249 {offsets = [0, 0], sizes = [2, 1], strides = [1, 1]} : vector<16x1xf32> to vector<2x1xf32>
    %251 = vector.extract_strided_slice %249 {offsets = [2, 0], sizes = [2, 1], strides = [1, 1]} : vector<16x1xf32> to vector<2x1xf32>
    %252 = arith.maximumf %250, %251 : vector<2x1xf32>
    %253 = vector.extract_strided_slice %249 {offsets = [4, 0], sizes = [2, 1], strides = [1, 1]} : vector<16x1xf32> to vector<2x1xf32>
    %254 = arith.maximumf %252, %253 : vector<2x1xf32>
    %255 = vector.extract_strided_slice %249 {offsets = [6, 0], sizes = [2, 1], strides = [1, 1]} : vector<16x1xf32> to vector<2x1xf32>
    %256 = arith.maximumf %254, %255 : vector<2x1xf32>
    %257 = vector.extract_strided_slice %249 {offsets = [8, 0], sizes = [2, 1], strides = [1, 1]} : vector<16x1xf32> to vector<2x1xf32>
    %258 = arith.maximumf %256, %257 : vector<2x1xf32>
    %259 = vector.extract_strided_slice %249 {offsets = [10, 0], sizes = [2, 1], strides = [1, 1]} : vector<16x1xf32> to vector<2x1xf32>
    %260 = arith.maximumf %258, %259 : vector<2x1xf32>
    %261 = vector.extract_strided_slice %249 {offsets = [12, 0], sizes = [2, 1], strides = [1, 1]} : vector<16x1xf32> to vector<2x1xf32>
    %262 = arith.maximumf %260, %261 : vector<2x1xf32>
    %263 = vector.extract_strided_slice %249 {offsets = [14, 0], sizes = [2, 1], strides = [1, 1]} : vector<16x1xf32> to vector<2x1xf32>
    %264 = arith.maximumf %262, %263 : vector<2x1xf32>
    %265 = vector.extract_strided_slice %249 {offsets = [0, 0], sizes = [2, 1], strides = [1, 1]} : vector<16x1xf32> to vector<2x1xf32>
    %266 = arith.subf %265, %264 : vector<2x1xf32>
    %267 = math.exp %266 : vector<2x1xf32>
    %268 = vector.extract_strided_slice %249 {offsets = [2, 0], sizes = [2, 1], strides = [1, 1]} : vector<16x1xf32> to vector<2x1xf32>
    %269 = arith.subf %268, %264 : vector<2x1xf32>
    %270 = math.exp %269 : vector<2x1xf32>
    %271 = vector.extract_strided_slice %249 {offsets = [4, 0], sizes = [2, 1], strides = [1, 1]} : vector<16x1xf32> to vector<2x1xf32>
    %272 = arith.subf %271, %264 : vector<2x1xf32>
    %273 = math.exp %272 : vector<2x1xf32>
    %274 = vector.extract_strided_slice %249 {offsets = [6, 0], sizes = [2, 1], strides = [1, 1]} : vector<16x1xf32> to vector<2x1xf32>
    %275 = arith.subf %274, %264 : vector<2x1xf32>
    %276 = math.exp %275 : vector<2x1xf32>
    %277 = vector.extract_strided_slice %249 {offsets = [8, 0], sizes = [2, 1], strides = [1, 1]} : vector<16x1xf32> to vector<2x1xf32>
    %278 = arith.subf %277, %264 : vector<2x1xf32>
    %279 = math.exp %278 : vector<2x1xf32>
    %280 = vector.extract_strided_slice %249 {offsets = [10, 0], sizes = [2, 1], strides = [1, 1]} : vector<16x1xf32> to vector<2x1xf32>
    %281 = arith.subf %280, %264 : vector<2x1xf32>
    %282 = math.exp %281 : vector<2x1xf32>
    %283 = vector.extract_strided_slice %249 {offsets = [12, 0], sizes = [2, 1], strides = [1, 1]} : vector<16x1xf32> to vector<2x1xf32>
    %284 = arith.subf %283, %264 : vector<2x1xf32>
    %285 = math.exp %284 : vector<2x1xf32>
    %286 = vector.extract_strided_slice %249 {offsets = [14, 0], sizes = [2, 1], strides = [1, 1]} : vector<16x1xf32> to vector<2x1xf32>
    %287 = arith.subf %286, %264 : vector<2x1xf32>
    %288 = math.exp %287 : vector<2x1xf32>
    %289 = arith.addf %267, %270 : vector<2x1xf32>
    %290 = arith.addf %289, %273 : vector<2x1xf32>
    %291 = arith.addf %290, %276 : vector<2x1xf32>
    %292 = arith.addf %291, %279 : vector<2x1xf32>
    %293 = arith.addf %292, %282 : vector<2x1xf32>
    %294 = arith.addf %293, %285 : vector<2x1xf32>
    %295 = arith.addf %294, %288 : vector<2x1xf32>
    %296 = tpu.reciprocal %295 {approx = true} : vector<2x1xf32> -> vector<2x1xf32>
    %cst_72 = arith.constant 0.000000e+00 : f32
    %297 = vector.broadcast %cst_72 : f32 to vector<2x64xf32>
    %298 = vector.extract_strided_slice %236 {offsets = [0, 0], sizes = [2, 64], strides = [1, 1]} : vector<16x64xf32> to vector<2x64xf32>
    %299 = vector.broadcast %267 : vector<2x1xf32> to vector<2x64xf32>
    %300 = arith.mulf %299, %298 : vector<2x64xf32>
    %301 = arith.addf %297, %300 : vector<2x64xf32>
    %302 = vector.extract_strided_slice %236 {offsets = [2, 0], sizes = [2, 64], strides = [1, 1]} : vector<16x64xf32> to vector<2x64xf32>
    %303 = vector.broadcast %270 : vector<2x1xf32> to vector<2x64xf32>
    %304 = arith.mulf %303, %302 : vector<2x64xf32>
    %305 = arith.addf %301, %304 : vector<2x64xf32>
    %306 = vector.extract_strided_slice %236 {offsets = [4, 0], sizes = [2, 64], strides = [1, 1]} : vector<16x64xf32> to vector<2x64xf32>
    %307 = vector.broadcast %273 : vector<2x1xf32> to vector<2x64xf32>
    %308 = arith.mulf %307, %306 : vector<2x64xf32>
    %309 = arith.addf %305, %308 : vector<2x64xf32>
    %310 = vector.extract_strided_slice %236 {offsets = [6, 0], sizes = [2, 64], strides = [1, 1]} : vector<16x64xf32> to vector<2x64xf32>
    %311 = vector.broadcast %276 : vector<2x1xf32> to vector<2x64xf32>
    %312 = arith.mulf %311, %310 : vector<2x64xf32>
    %313 = arith.addf %309, %312 : vector<2x64xf32>
    %314 = vector.extract_strided_slice %236 {offsets = [8, 0], sizes = [2, 64], strides = [1, 1]} : vector<16x64xf32> to vector<2x64xf32>
    %315 = vector.broadcast %279 : vector<2x1xf32> to vector<2x64xf32>
    %316 = arith.mulf %315, %314 : vector<2x64xf32>
    %317 = arith.addf %313, %316 : vector<2x64xf32>
    %318 = vector.extract_strided_slice %236 {offsets = [10, 0], sizes = [2, 64], strides = [1, 1]} : vector<16x64xf32> to vector<2x64xf32>
    %319 = vector.broadcast %282 : vector<2x1xf32> to vector<2x64xf32>
    %320 = arith.mulf %319, %318 : vector<2x64xf32>
    %321 = arith.addf %317, %320 : vector<2x64xf32>
    %322 = vector.extract_strided_slice %236 {offsets = [12, 0], sizes = [2, 64], strides = [1, 1]} : vector<16x64xf32> to vector<2x64xf32>
    %323 = vector.broadcast %285 : vector<2x1xf32> to vector<2x64xf32>
    %324 = arith.mulf %323, %322 : vector<2x64xf32>
    %325 = arith.addf %321, %324 : vector<2x64xf32>
    %326 = vector.extract_strided_slice %236 {offsets = [14, 0], sizes = [2, 64], strides = [1, 1]} : vector<16x64xf32> to vector<2x64xf32>
    %327 = vector.broadcast %288 : vector<2x1xf32> to vector<2x64xf32>
    %328 = arith.mulf %327, %326 : vector<2x64xf32>
    %329 = arith.addf %325, %328 : vector<2x64xf32>
    %330 = vector.broadcast %296 : vector<2x1xf32> to vector<2x64xf32>
    %331 = arith.mulf %329, %330 : vector<2x64xf32>
    %c0_73 = arith.constant 0 : index
    %c0_74 = arith.constant 0 : index
    %332 = vector.load %arg9[%c0_73, %c0_74] : memref<2x64xf32, #tpu.memory_space<vmem>>, vector<2x64xf32>
    tpu.vector_store %arg9[%c0_73, %c0_74], %331 {strides = array<i32>} : memref<2x64xf32, #tpu.memory_space<vmem>>, vector<2x64xf32>,
    return
  }
}

</mosaic_0001>

<bundles_post_ra>
// kernel: hunk_rnn_forward.1
= control target key start
LH: loop header
LB: loop body
LE: loop exit
PB: predicated region body
PF: predicated region fallthrough
CT: control target
= control target key end

     0   :  { %v1281_v2 = vmov 0   ;;  %vm79_vm0 = vcmask 261120   ;;  %s1642_s0 = inlined_call_operand.vmem [shape: bf16[16,32], index: 0, kind: input, shape index: {}]   ;;  %s1643_s1 = inlined_call_operand.vmem [shape: f32[2,64], index: 1, kind: input, shape index: {}]   ;;  %s1644_s2 = inlined_call_operand.vmem [shape: bf16[32,192], index: 2, kind: input, shape index: {}]   ;;  %s1645_s3 = inlined_call_operand.vmem [shape: bf16[64,192], index: 3, kind: input, shape index: {}]   ;;  %s1646_s4 = inlined_call_operand.vmem [shape: f32[1,192], index: 4, kind: input, shape index: {}]   ;;  %s1647_s5 = inlined_call_operand.vmem [shape: f32[1,64], index: 5, kind: input, shape index: {}]   ;;  %s1648_s6 = inlined_call_operand.vmem [shape: bf16[64,64], index: 6, kind: input, shape index: {}]   ;;  %s1649_s7 = inlined_call_operand.vmem [shape: f32[1,64], index: 7, kind: input, shape index: {}]   ;;  %s1650_s8 = inlined_call_operand.vmem [shape: f32[1,64], index: 8, kind: input, shape index: {}]   ;;  %s1651_s9 = inlined_call_operand.hbm [shape: f32[2,64], index: 9, kind: output, shape index: {0}]   ;;  %s1652_s10 = inlined_call_operand.vmem [shape: f32[2,64], index: 10, kind: output, shape index: {1}]  }
   0x1   :  { %v1170_v0 = vld [vmem:[%s1644_s2 + $0x14] ss:$8 sps:$4 sm:$0xff]   ;;  %115 = vmatprep.mubr.bf16.mxu0 %v1281_v2  ;;  %219 = vmatprep.mubr.bf16.mxu1 %v1281_v2  ;;  %v1174_v3 = vld [vmem:[%s1644_s2 + $0x10] ss:$8 sps:$4 sm:$0xff]   ;;  %v1176_v5 = vld [vmem:[%s1644_s2 + $0x4] ss:$8 sps:$4 sm:$0xff]  }
   0x2   :  { %v1347_v1 = vld [vmem:[%s1645_s3 + $0x34] ss:$8 sps:$4 sm:$0xff]   ;;  %95 = vmatprep.subr.bf16.mxu0 %v1170_v0  ;;  %v1357_v4 = vld [vmem:[%s1645_s3 + $0x30] ss:$8 sps:$4 sm:$0xff]   ;;  %1169 = vset.pattern.permute.xlu1 %v1281_v2  ;;  %v1369_v6 = vld [vmem:[%s1645_s3 + $0x24] ss:$8 sps:$4 sm:$0xff]  }
   0x3   :  { %195 = vmatprep.subr.bf16.mxu1 %v1347_v1  ;;  %1168 = vset.pattern.permute.xlu0 %v1281_v2  ;;  %v1180_v7 = vld [vmem:[%s1644_s2] ss:$8 sps:$4 sm:$0xff]   ;;  %v1386_v10 = vld [vmem:[%s1645_s3 + $0x14] ss:$8 sps:$4 sm:$0xff]   ;;  %v1392_v11 = vld [vmem:[%s1645_s3 + $0x10] ss:$8 sps:$4 sm:$0xff]  }
   0x4   :  { %96 = vmatpush1.bf16.msra.mxu0 %v1174_v3  ;;  %196 = vmatpush1.bf16.msra.mxu1 %v1357_v4  ;;  %v1377_v8 = vld [vmem:[%s1645_s3 + $0x20] ss:$8 sps:$4 sm:$0xff]   ;;  %v1398_v12 = vld [vmem:[%s1645_s3 + $0x4] ss:$8 sps:$4 sm:$0xff]  }
   0x5   :  { %97 = vmatprep.subr.bf16.mxu0 %v1176_v5  ;;  %197 = vmatprep.subr.bf16.mxu1 %v1369_v6  ;;  %v1182_v9 = vld [vmem:[%s1642_s0] sm:$0xff]  }
   0x6   :  { %v1404_v13 = vld [vmem:[%s1645_s3] ss:$8 sps:$4 sm:$0xff]  }
   0x7   :  { %v141_v14 = vld [vmem:[%s1643_s1] sm:$0x3] }
   0x8   :  { %98 = vmatpush1.bf16.msra.mxu0 %v1180_v7  ;;  %198 = vmatpush1.bf16.msra.mxu1 %v1377_v8 }
   0x9   :  { %199 = vmatprep.subr.bf16.mxu1 %v1386_v10  ;;  %274 = vmatprep.subr.bf16.mxu0 %v1347_v1 }
   0xb   :  { %1113 = vmatmul.mubr.msk.bf16.vlgmr.msra.gmra.mxu0 %vm79_vm0, %v1182_v9 }
   0xc   :  { %200 = vmatpush1.bf16.msra.mxu1 %v1392_v11  ;;  %275 = vmatpush1.bf16.msra.mxu0 %v1357_v4 }
   0xd   :  { %16 = vsyncpa [#allocation4], 0  ;;  %201 = vmatprep.subr.bf16.mxu1 %v1398_v12  ;;  %276 = vmatprep.subr.bf16.mxu0 %v1369_v6  ;;  %v142_v15 = vpack.c.bf16 %v141_v14, %v141_v14  ;;  %vm183_vm1 = vcmask 523264   ;;  %v44_v16 = vlaneseq  ;;  %v42_v19 = vld [vmem:[%s1646_s4] sm:$0x3]  ;;  %s1282_s20 = smov 64  }
   0xe   :  { %298 = vmatprep.mubr.bf16.mxu0 %v1281_v2  ;;  %v1443_v35 = vld [vmem:[%s1647_s5] ss:$0 sm:$0xff]  ;;  %vm255_vm2 = vcmask 254976   ;;  %vm257_vm3 = vcmask 517376   ;;  %vm422_vm4 = vcmask 259076   ;;  %vm424_vm5 = vcmask 521476  }
   0xf   :  { %v45_v17 = vshrl.u32 %v44_v16, 7  ;;  %vm1284_vm6 = vmmov 0   ;;  %vm338_vm7 = vcmask 257026   ;;  %vm340_vm8 = vcmask 519426  }
  0x10   :  { %202 = vmatpush1.bf16.msra.mxu1 %v1404_v13  ;;  %277 = vmatpush1.bf16.msra.mxu0 %v1377_v8  ;;  %vm506_vm9 = vcmask 261126   ;;  %vm508_vm10 = vcmask 523526   ;;  %vm831_vm11 = vcmask 523270   ;;  %vm1088_vm12 = vcmask 517120  }
  0x11   :  { %278 = vmatprep.subr.bf16.mxu0 %v1386_v10  ;;  %358 = vmatprep.subr.bf16.mxu1 %v1347_v1  ;;  %v46_v18 = vsub.s32 0, %v45_v17  ;;  %v50_v34 = vsub.s32 1, %v45_v17 }
  0x13   :  { %1123 = vmatmul.mubr.msk.bf16.vlgmr.msra.gmra.mxu1 %vm183_vm1, %v142_v15  ;;  %v47_v21 = vrot.slane %v42_v19, %v46_v18  ;;  %v1445_v36 = vrot.slane %v42_v19, %v50_v34 }
  0x14   :  { %279 = vmatpush1.bf16.msra.mxu0 %v1392_v11  ;;  %359 = vmatpush1.bf16.msra.mxu1 %v1357_v4 }
  0x15   :  { %280 = vmatprep.subr.bf16.mxu0 %v1398_v12  ;;  %360 = vmatprep.subr.bf16.mxu1 %v1369_v6 }
  0x16   :  { %382 = vmatprep.mubr.bf16.mxu1 %v1281_v2 }
  0x18   :  { %281 = vmatpush1.bf16.msra.mxu0 %v1404_v13  ;;  %361 = vmatpush1.bf16.msra.mxu1 %v1377_v8 }
  0x19   :  { %362 = vmatprep.subr.bf16.mxu1 %v1386_v10  ;;  %442 = vmatprep.subr.bf16.mxu0 %v1347_v1 }
  0x1c   :  { %363 = vmatpush1.bf16.msra.mxu1 %v1392_v11 }
  0x1d   :  { %364 = vmatprep.subr.bf16.mxu1 %v1398_v12 }
  0x20   :  { %365 = vmatpush1.bf16.msra.mxu1 %v1404_v13 }
  0x21   :  { %526 = vmatprep.subr.bf16.mxu1 %v1347_v1 }
  0xcb   :  { %v117_v20 = vpop.f32.mrf.mxu0 }
  0xcc   :  { %v1435_v24 = vadd.f32 %v117_v20, %v47_v21 }
  0xcd   :  { %v119_v22 = vpop.f32.mrf.mxu0 }
  0xce   :  { %v1449_v39 = vadd.f32 %v119_v22, %v1445_v36 }
  0xcf   :  { %v121_v23 = vpop.f32.mrf.mxu0 }
  0xd0   :  { %v1437_v25 = vadd.f32 %v121_v23, %v47_v21 }
  0xd1   :  { %v1469_v51 = vpop.f32.mrf.mxu0 }
  0xd3   :  { %v221_v26 = vpop.f32.mrf.mxu1 }
  0xd4   :  { %v228_v27 = vadd.f32 %v221_v26, %v1435_v24 }
  0xd5   :  { %v223_v28 = vpop.f32.mrf.mxu1 }
  0xd6   :  { %v1124_v29 = vmul.f32 -1.442695, %v228_v27  ;;  %v235_v37 = vadd.f32 %v1443_v35, %v223_v28 }
  0xd7   :  { %v225_v30 = vpop.f32.mrf.mxu1 }
  0xd8   :  { %1193 = vpow2.f32 %v1124_v29 }
  0xd9   :  { %v226_v31 = vpop.f32.mrf.mxu1 }
  0xe5   :  { %v1194_v32 = vpop.eup %1193 }
  0xe6   :  { %v232_v33 = vadd.f32 1.0, %v1194_v32 }
  0xe8   :  { %1195 = vrcp.f32 %v232_v33 }
  0xf5   :  { %v1196_v38 = vpop.eup %1195 }
  0xf6   :  { %v236_v40 = vmul.f32 %v1196_v38, %v235_v37  ;;  %v239_v44 = vsub.f32 1.0, %v1196_v38 }
  0xf8   :  { %v237_v41 = vadd.f32 %v236_v40, %v1449_v39 }
  0xfa   :  { %1197 = vtanh.f32 %v237_v41 }
 0x107   :  { %v1198_v42 = vpop.eup %1197 }
 0x108   :  { %241 = vrot.lane.b32.xlu0 %v1198_v42, %s1282_s20 }
 0x10c   :  { %246 = vrot.lane.b32.xlu0 %v141_v14, %s1282_s20 }
 0x17a   :  { %v242_v43 = vpop.permute.xlu0 %241 }
 0x17b   :  { %v244_v46 = vmul.f32 %v242_v43, %v239_v44 }
 0x17e   :  { %v247_v45 = vpop.permute.xlu0 %246 }
 0x17f   :  { %v249_v47 = vmul.f32 %v1196_v38, %v247_v45 }
 0x181   :  { %v1454_v48 = vadd.f32 %v249_v47, %v244_v46 }
 0x183   :  { %v259_v49 = vpack.c.bf16 %v1454_v48, %v1454_v48  ;;  %v330_v9 = vrot.slane %v1454_v48, 6 }
 0x185   :  { %261 = vrot.lane.b32.xlu1 %v259_v49, %s1282_s20 }
 0x1f7   :  { %v262_v50 = vpop.permute.xlu1 %261 }
 0x1f8   :  { %1125 = vmatmul.mubr.msk.bf16.vlgmr.msra.gmra.mxu0 %vm183_vm1, %v262_v50 }
 0x1f9   :  { %443 = vmatpush1.bf16.msra.mxu0 %v1357_v4  ;;  %466 = vmatprep.mubr.bf16.mxu0 %v1281_v2 }
 0x1fa   :  { %444 = vmatprep.subr.bf16.mxu0 %v1369_v6 }
 0x1fd   :  { %445 = vmatpush1.bf16.msra.mxu0 %v1377_v8 }
 0x1fe   :  { %446 = vmatprep.subr.bf16.mxu0 %v1386_v10 }
 0x201   :  { %447 = vmatpush1.bf16.msra.mxu0 %v1392_v11 }
 0x202   :  { %448 = vmatprep.subr.bf16.mxu0 %v1398_v12 }
 0x205   :  { %449 = vmatpush1.bf16.msra.mxu0 %v1404_v13 }
 0x206   :  { %601 = vmatprep.subr.bf16.mxu0 %v1347_v1 }
 0x2b8   :  { %v300_v52 = vpop.f32.mrf.mxu0 }
 0x2b9   :  { %v308_v53 = vrot.slane %v300_v52, 6 }
 0x2ba   :  { %v302_v54 = vpop.f32.mrf.mxu0 }
 0x2bb   :  { %v310_v55 = vadd.f32 %v308_v53, %v1435_v24  ;;  %v317_v61 = vadd.f32 %v1443_v35, %v302_v54 }
 0x2bc   :  { %v304_v56 = vpop.f32.mrf.mxu0 }
 0x2bd   :  { %v1126_v57 = vmul.f32 -1.442695, %v310_v55  ;;  %v319_v62 = vrot.slane %v317_v61, 6 }
 0x2be   :  { %v305_v58 = vpop.f32.mrf.mxu0 }
 0x2bf   :  { %1199 = vpow2.f32 %v1126_v57 }
 0x2cc   :  { %v1200_v59 = vpop.eup %1199 }
 0x2cd   :  { %v314_v60 = vadd.f32 1.0, %v1200_v59 }
 0x2cf   :  { %1201 = vrcp.f32 %v314_v60 }
 0x2dc   :  { %v1202_v63 = vpop.eup %1201 }
 0x2dd   :  { %v321_v0 = vmul.f32 %v1202_v63, %v319_v62  ;;  %v324_v7 = vsub.f32 1.0, %v1202_v63  ;;  %v332_v15 = vmul.f32 %v1202_v63, %v330_v9 }
 0x2df   :  { %v322_v3 = vadd.f32 %v321_v0, %v1449_v39 }
 0x2e1   :  { %1203 = vtanh.f32 %v322_v3 }
 0x2ee   :  { %v1204_v5 = vpop.eup %1203 }
 0x2ef   :  { %326 = vrot.lane.b32.xlu1 %v1204_v5, %s1282_s20 }
 0x361   :  { %v327_v14 = vpop.permute.xlu1 %326 }
 0x362   :  { %v329_v16 = vmul.f32 %v327_v14, %v324_v7 }
 0x364   :  { %v1476_v17 = vadd.f32 %v332_v15, %v329_v16 }
 0x366   :  { %v342_v18 = vpack.c.bf16 %v1476_v17, %v1476_v17  ;;  %v414_v42 = vrot.slane %v1476_v17, 6 }
 0x368   :  { %v344_v19 = vrot.slane %v342_v18, 1 }
 0x36a   :  { %345 = vrot.lane.b32.xlu0 %v344_v19, %s1282_s20 }
 0x3dc   :  { %v346_v20 = vpop.permute.xlu0 %345 }
 0x3dd   :  { %1127 = vmatmul.mubr.msk.bf16.vlgmr.msra.gmra.mxu1 %vm183_vm1, %v346_v20 }
 0x3de   :  { %527 = vmatpush1.bf16.msra.mxu1 %v1357_v4  ;;  %550 = vmatprep.mubr.bf16.mxu1 %v1281_v2 }
 0x3df   :  { %528 = vmatprep.subr.bf16.mxu1 %v1369_v6 }
 0x3e2   :  { %529 = vmatpush1.bf16.msra.mxu1 %v1377_v8 }
 0x3e3   :  { %530 = vmatprep.subr.bf16.mxu1 %v1386_v10 }
 0x3e6   :  { %531 = vmatpush1.bf16.msra.mxu1 %v1392_v11 }
 0x3e7   :  { %532 = vmatprep.subr.bf16.mxu1 %v1398_v12 }
 0x3ea   :  { %533 = vmatpush1.bf16.msra.mxu1 %v1404_v13 }
 0x3eb   :  { %683 = vmatprep.subr.bf16.mxu1 %v1347_v1 }
 0x49d   :  { %v384_v21 = vpop.f32.mrf.mxu1 }
 0x49e   :  { %v392_v22 = vrot.slane %v384_v21, 4 }
 0x49f   :  { %v386_v23 = vpop.f32.mrf.mxu1 }
 0x4a0   :  { %v394_v26 = vadd.f32 %v392_v22, %v1435_v24  ;;  %v401_v32 = vadd.f32 %v1443_v35, %v386_v23 }
 0x4a1   :  { %v388_v27 = vpop.f32.mrf.mxu1 }
 0x4a2   :  { %v1128_v28 = vmul.f32 -1.442695, %v394_v26  ;;  %v403_v33 = vrot.slane %v401_v32, 4 }
 0x4a3   :  { %v389_v29 = vpop.f32.mrf.mxu1 }
 0x4a4   :  { %1205 = vpow2.f32 %v1128_v28 }
 0x4b1   :  { %v1206_v30 = vpop.eup %1205 }
 0x4b2   :  { %v398_v31 = vadd.f32 1.0, %v1206_v30 }
 0x4b4   :  { %1207 = vrcp.f32 %v398_v31  ;;  %v1534_v31 = vadd.f32 %v1469_v51, %v1445_v36 }
 0x4c1   :  { %v1208_v34 = vpop.eup %1207 }
 0x4c2   :  { %v405_v37 = vmul.f32 %v1208_v34, %v403_v33  ;;  %v408_v41 = vsub.f32 1.0, %v1208_v34  ;;  %v416_v44 = vmul.f32 %v1208_v34, %v414_v42 }
 0x4c4   :  { %v406_v38 = vadd.f32 %v405_v37, %v1449_v39 }
 0x4c6   :  { %1209 = vtanh.f32 %v406_v38 }
 0x4d3   :  { %v1210_v40 = vpop.eup %1209 }
 0x4d4   :  { %410 = vrot.lane.b32.xlu1 %v1210_v40, %s1282_s20 }
 0x546   :  { %v411_v43 = vpop.permute.xlu1 %410 }
 0x547   :  { %v413_v45 = vmul.f32 %v411_v43, %v408_v41 }
 0x549   :  { %v1496_v46 = vadd.f32 %v416_v44, %v413_v45 }
 0x54b   :  { %v426_v47 = vpack.c.bf16 %v1496_v46, %v1496_v46 }
 0x54d   :  { %v428_v49 = vrot.slane %v426_v47, 2 }
 0x54f   :  { %429 = vrot.lane.b32.xlu0 %v428_v49, %s1282_s20 }
 0x5c1   :  { %v430_v50 = vpop.permute.xlu0 %429 }
 0x5c2   :  { %1129 = vmatmul.mubr.msk.bf16.vlgmr.msra.gmra.mxu0 %vm183_vm1, %v430_v50 }
 0x5c3   :  { %602 = vmatpush1.bf16.msra.mxu0 %v1357_v4  ;;  %625 = vmatprep.mubr.bf16.mxu0 %v1281_v2 }
 0x5c4   :  { %603 = vmatprep.subr.bf16.mxu0 %v1369_v6 }
 0x5c7   :  { %604 = vmatpush1.bf16.msra.mxu0 %v1377_v8 }
 0x5c8   :  { %605 = vmatprep.subr.bf16.mxu0 %v1386_v10 }
 0x5cb   :  { %606 = vmatpush1.bf16.msra.mxu0 %v1392_v11 }
 0x5cc   :  { %607 = vmatprep.subr.bf16.mxu0 %v1398_v12 }
 0x5cf   :  { %608 = vmatpush1.bf16.msra.mxu0 %v1404_v13 }
 0x5d0   :  { %765 = vmatprep.subr.bf16.mxu0 %v1347_v1 }
 0x682   :  { %v468_v52 = vpop.f32.mrf.mxu0 }
 0x683   :  { %v476_v53 = vrot.slane %v468_v52, 2 }
 0x684   :  { %v470_v54 = vpop.f32.mrf.mxu0 }
 0x685   :  { %v478_v55 = vadd.f32 %v476_v53, %v1435_v24  ;;  %v485_v61 = vadd.f32 %v1443_v35, %v470_v54  ;;  %v498_v24 = vrot.slane %v1496_v46, 6 }
 0x686   :  { %v472_v56 = vpop.f32.mrf.mxu0 }
 0x687   :  { %v1130_v57 = vmul.f32 -1.442695, %v478_v55  ;;  %v487_v62 = vrot.slane %v485_v61, 2 }
 0x688   :  { %v473_v58 = vpop.f32.mrf.mxu0 }
 0x689   :  { %1211 = vpow2.f32 %v1130_v57 }
 0x696   :  { %v1212_v59 = vpop.eup %1211 }
 0x697   :  { %v482_v60 = vadd.f32 1.0, %v1212_v59 }
 0x699   :  { %1213 = vrcp.f32 %v482_v60 }
 0x6a6   :  { %v1214_v63 = vpop.eup %1213 }
 0x6a7   :  { %v489_v0 = vmul.f32 %v1214_v63, %v487_v62  ;;  %v492_v5 = vsub.f32 1.0, %v1214_v63  ;;  %v500_v9 = vmul.f32 %v1214_v63, %v498_v24 }
 0x6a9   :  { %v490_v3 = vadd.f32 %v489_v0, %v1449_v39 }
 0x6ab   :  { %1215 = vtanh.f32 %v490_v3 }
 0x6b8   :  { %v1216_v1 = vpop.eup %1215 }
 0x6b9   :  { %494 = vrot.lane.b32.xlu1 %v1216_v1, %s1282_s20 }
 0x72b   :  { %v495_v7 = vpop.permute.xlu1 %494 }
 0x72c   :  { %v497_v14 = vmul.f32 %v495_v7, %v492_v5 }
 0x72e   :  { %v1516_v15 = vadd.f32 %v500_v9, %v497_v14 }
 0x730   :  { %v510_v16 = vpack.c.bf16 %v1516_v15, %v1516_v15  ;;  %v576_v38 = vrot.slane %v1516_v15, 6 }
 0x732   :  { %v512_v18 = vrot.slane %v510_v16, 3 }
 0x734   :  { %513 = vrot.lane.b32.xlu0 %v512_v18, %s1282_s20 }
 0x7a6   :  { %v514_v19 = vpop.permute.xlu0 %513 }
 0x7a7   :  { %1131 = vmatmul.mubr.msk.bf16.vlgmr.msra.gmra.mxu1 %vm183_vm1, %v514_v19 }
 0x7a8   :  { %684 = vmatpush1.bf16.msra.mxu1 %v1357_v4  ;;  %707 = vmatprep.mubr.bf16.mxu1 %v1281_v2 }
 0x7a9   :  { %685 = vmatprep.subr.bf16.mxu1 %v1369_v6 }
 0x7ac   :  { %686 = vmatpush1.bf16.msra.mxu1 %v1377_v8 }
 0x7ad   :  { %687 = vmatprep.subr.bf16.mxu1 %v1386_v10 }
 0x7b0   :  { %688 = vmatpush1.bf16.msra.mxu1 %v1392_v11 }
 0x7b1   :  { %689 = vmatprep.subr.bf16.mxu1 %v1398_v12 }
 0x7b4   :  { %690 = vmatpush1.bf16.msra.mxu1 %v1404_v13 }
 0x867   :  { %v552_v39 = vpop.f32.mrf.mxu1 }
 0x868   :  { %v559_v20 = vadd.f32 %v552_v39, %v1437_v25 }
 0x869   :  { %v554_v21 = vpop.f32.mrf.mxu1 }
 0x86a   :  { %v1132_v22 = vmul.f32 -1.442695, %v559_v20  ;;  %v566_v29 = vadd.f32 %v1443_v35, %v554_v21 }
 0x86b   :  { %v556_v23 = vpop.f32.mrf.mxu1 }
 0x86c   :  { %1217 = vpow2.f32 %v1132_v22 }
 0x86d   :  { %v557_v26 = vpop.f32.mrf.mxu1 }
 0x879   :  { %v1218_v27 = vpop.eup %1217 }
 0x87a   :  { %v563_v28 = vadd.f32 1.0, %v1218_v27 }
 0x87c   :  { %1219 = vrcp.f32 %v563_v28 }
 0x889   :  { %v1220_v30 = vpop.eup %1219 }
 0x88a   :  { %v567_v32 = vmul.f32 %v1220_v30, %v566_v29  ;;  %v570_v37 = vsub.f32 1.0, %v1220_v30  ;;  %v578_v41 = vmul.f32 %v1220_v30, %v576_v38 }
 0x88c   :  { %v568_v33 = vadd.f32 %v567_v32, %v1534_v31 }
 0x88e   :  { %1221 = vtanh.f32 %v568_v33 }
 0x89b   :  { %v1222_v34 = vpop.eup %1221 }
 0x89c   :  { %572 = vrot.lane.b32.xlu1 %v1222_v34, %s1282_s20 }
 0x90e   :  { %v573_v40 = vpop.permute.xlu1 %572 }
 0x90f   :  { %v575_v42 = vmul.f32 %v573_v40, %v570_v37 }
 0x911   :  { %v1539_v43 = vadd.f32 %v578_v41, %v575_v42 }
 0x913   :  { %v586_v44 = vpack.c.bf16 %v1539_v43, %v1539_v43  ;;  %v657_v55 = vrot.slane %v1539_v43, 6 }
 0x915   :  { %588 = vrot.lane.b32.xlu0 %v586_v44, %s1282_s20 }
 0x987   :  { %v589_v36 = vpop.permute.xlu0 %588 }
 0x988   :  { %1133 = vmatmul.mubr.msk.bf16.vlgmr.msra.gmra.mxu0 %vm183_vm1, %v589_v36 }
 0x989   :  { %766 = vmatpush1.bf16.msra.mxu0 %v1357_v4  ;;  %789 = vmatprep.mubr.bf16.mxu0 %v1281_v2 }
 0x98a   :  { %767 = vmatprep.subr.bf16.mxu0 %v1369_v6 }
 0x98d   :  { %768 = vmatpush1.bf16.msra.mxu0 %v1377_v8 }
 0x98e   :  { %769 = vmatprep.subr.bf16.mxu0 %v1386_v10 }
 0x991   :  { %770 = vmatpush1.bf16.msra.mxu0 %v1392_v11 }
 0x992   :  { %771 = vmatprep.subr.bf16.mxu0 %v1398_v12 }
 0x995   :  { %772 = vmatpush1.bf16.msra.mxu0 %v1404_v13 }
 0xa48   :  { %v627_v51 = vpop.f32.mrf.mxu0 }
 0xa49   :  { %v635_v45 = vrot.slane %v627_v51, 6 }
 0xa4a   :  { %v629_v47 = vpop.f32.mrf.mxu0 }
 0xa4b   :  { %v637_v49 = vadd.f32 %v635_v45, %v1437_v25  ;;  %v644_v8 = vadd.f32 %v1443_v35, %v629_v47 }
 0xa4c   :  { %v631_v4 = vpop.f32.mrf.mxu0 }
 0xa4d   :  { %v1134_v50 = vmul.f32 -1.442695, %v637_v49  ;;  %v646_v10 = vrot.slane %v644_v8, 6  ;;  %v1192_v8 = vld [vmem:[%s1648_s6] sm:$0xff]  }
 0xa4e   :  { %v632_v2 = vpop.f32.mrf.mxu0 }
 0xa4f   :  { %1223 = vpow2.f32 %v1134_v50 }
 0xa5c   :  { %v1224_v6 = vpop.eup %1223 }
 0xa5d   :  { %v641_v52 = vadd.f32 1.0, %v1224_v6 }
 0xa5f   :  { %1225 = vrcp.f32 %v641_v52  ;;  %v1283_v52 = vmov 0.0  }
 0xa60   :  { %1151 = vmatprep.subr.bf16.mxu1 %v1283_v52 }
 0xa6c   :  { %v1226_v11 = vpop.eup %1225 }
 0xa6d   :  { %v648_v53 = vmul.f32 %v1226_v11, %v646_v10  ;;  %v651_v54 = vsub.f32 1.0, %v1226_v11  ;;  %v659_v57 = vmul.f32 %v1226_v11, %v657_v55 }
 0xa6f   :  { %v649_v12 = vadd.f32 %v648_v53, %v1534_v31 }
 0xa71   :  { %1227 = vtanh.f32 %v649_v12 }
 0xa7e   :  { %v1228_v13 = vpop.eup %1227 }
 0xa7f   :  { %653 = vrot.lane.b32.xlu1 %v1228_v13, %s1282_s20 }
 0xaf1   :  { %v654_v56 = vpop.permute.xlu1 %653 }
 0xaf2   :  { %v656_v58 = vmul.f32 %v654_v56, %v651_v54 }
 0xaf4   :  { %v1558_v59 = vadd.f32 %v659_v57, %v656_v58 }
 0xaf6   :  { %v667_v60 = vpack.c.bf16 %v1558_v59, %v1558_v59  ;;  %v739_v23 = vrot.slane %v1558_v59, 6 }
 0xaf8   :  { %v669_v61 = vrot.slane %v667_v60, 1  ;;  %v1139_v60 = vld [vmem:[%s1649_s7] ss:$0 sm:$0xff]  ;;  %s1285_s7 = smov [#allocation3]  }
 0xafa   :  { %670 = vrot.lane.b32.xlu0 %v669_v61, %s1282_s20 }
 0xb6c   :  { %v671_v62 = vpop.permute.xlu0 %670 }
 0xb6d   :  { %1135 = vmatmul.mubr.msk.bf16.vlgmr.msra.gmra.mxu1 %vm183_vm1, %v671_v62 }
 0xb6e   :  { %1159 = vmatprep.mubr.msk.bf16.mxu1 %vm1284_vm6, %v1283_v52 }
 0xc2d   :  { %v709_v63 = vpop.f32.mrf.mxu1 }
 0xc2e   :  { %v717_v0 = vrot.slane %v709_v63, 4 }
 0xc2f   :  { %v711_v3 = vpop.f32.mrf.mxu1 }
 0xc30   :  { %v719_v1 = vadd.f32 %v717_v0, %v1437_v25  ;;  %v726_v16 = vadd.f32 %v1443_v35, %v711_v3  ;;  %v1145_v0 = vld [vmem:[%s1650_s8] ss:$0 sm:$0xff]  ;;  %s1096_s8 = sshll.u32 %s1285_s7, 4  ;;  %s1097_s8 = int_to_ptr.vmem [resolvable:$true] %s1096_s8 }
 0xc31   :  { %v713_v5 = vpop.f32.mrf.mxu1  ;;  %p1264_p1 = scmp.lt.s32.totalorder %s1097_s8, %s1097_s8 }
 0xc32   :  { %v1136_v24 = vmul.f32 -1.442695, %v719_v1  ;;  %v728_v18 = vrot.slane %v726_v16, 4 }
 0xc33   :  { %v714_v7 = vpop.f32.mrf.mxu1 }
 0xc34   :  { %1229 = vpow2.f32 %v1136_v24 }
 0xc41   :  { %v1230_v9 = vpop.eup %1229 }
 0xc42   :  { %v723_v14 = vadd.f32 1.0, %v1230_v9 }
 0xc44   :  { %1231 = vrcp.f32 %v723_v14 }
 0xc51   :  { %v1232_v19 = vpop.eup %1231 }
 0xc52   :  { %v730_v39 = vmul.f32 %v1232_v19, %v728_v18  ;;  %v733_v22 = vsub.f32 1.0, %v1232_v19  ;;  %v741_v27 = vmul.f32 %v1232_v19, %v739_v23 }
 0xc54   :  { %v731_v20 = vadd.f32 %v730_v39, %v1534_v31 }
 0xc56   :  { %1233 = vtanh.f32 %v731_v20 }
 0xc63   :  { %v1234_v21 = vpop.eup %1233 }
 0xc64   :  { %735 = vrot.lane.b32.xlu1 %v1234_v21, %s1282_s20 }
 0xcd6   :  { %v736_v26 = vpop.permute.xlu1 %735 }
 0xcd7   :  { %v738_v28 = vmul.f32 %v736_v26, %v733_v22 }
 0xcd9   :  { %v742_v29 = vadd.f32 %v741_v27, %v738_v28 }
 0xcdb   :  { %v749_v30 = vpack.c.bf16 %v742_v29, %v742_v29  ;;  %v821_v47 = vrot.slane %v742_v29, 6 }
 0xcdd   :  { %v751_v32 = vrot.slane %v749_v30, 2 }
 0xcdf   :  { %752 = vrot.lane.b32.xlu0 %v751_v32, %s1282_s20 }
 0xce3   :  { %252 = vrot.lane.b32.xlu0 %v1454_v48, %s1282_s20 }
 0xce7   :  { %419 = vrot.lane.b32.xlu0 %v1496_v46, %s1282_s20 }
 0xceb   :  { %581 = vrot.lane.b32.xlu0 %v1539_v43, %s1282_s20 }
 0xcef   :  { %744 = vrot.lane.b32.xlu0 %v742_v29, %s1282_s20 }
 0xd51   :  { %v753_v33 = vpop.permute.xlu0 %752 }
 0xd52   :  { %1137 = vmatmul.mubr.msk.bf16.vlgmr.msra.gmra.mxu0 %vm183_vm1, %v753_v33 }
 0xd55   :  { %v253_v34 = vpop.permute.xlu0 %252 }
 0xd56   :  { %256 = vst.msk [vmem:[#allocation2] sm:$0x3] %vm255_vm2, %v253_v34 }
 0xd57   :  { %258 = vst.msk [vmem:[#allocation2 + $0xe] sm:$0x3] %vm257_vm3, %v253_v34 }
 0xd59   :  { %v420_v48 = vpop.permute.xlu0 %419 }
 0xd5a   :  { %423 = vst.msk [vmem:[#allocation2] sm:$0x30] %vm422_vm4, %v420_v48 }
 0xd5b   :  { %425 = vst.msk [vmem:[#allocation2 + $0x6] sm:$0x30] %vm424_vm5, %v420_v48 }
 0xe12   :  { %v791_v46 = vpop.f32.mrf.mxu0 }
 0xe13   :  { %v799_v37 = vrot.slane %v791_v46, 2 }
 0xe14   :  { %v793_v38 = vpop.f32.mrf.mxu0 }
 0xe15   :  { %v801_v40 = vadd.f32 %v799_v37, %v1437_v25  ;;  %v808_v51 = vadd.f32 %v1443_v35, %v793_v38  ;;  %v1189_v25 = vld [vmem:[%s1648_s6 + $0x18] sm:$0xff]   ;;  %v1190_v35 = vld [vmem:[%s1648_s6 + $0x10] sm:$0xff]  }
 0xe16   :  { %v795_v41 = vpop.f32.mrf.mxu0  ;;  %1152 = vmatpush3.bf16.msra.mxu1 %v1189_v25 }
 0xe17   :  { %v1138_v42 = vmul.f32 -1.442695, %v801_v40  ;;  %v810_v45 = vrot.slane %v808_v51, 2  ;;  %1153 = vmatprep.subr.bf16.mxu1 %v1283_v52 }
 0xe18   :  { %v796_v43 = vpop.f32.mrf.mxu0 }
 0xe19   :  { %1235 = vpow2.f32 %v1138_v42 }
 0xe1a   :  { %1154 = vmatpush3.bf16.msra.mxu1 %v1190_v35 }
 0xe1b   :  { %1155 = vmatprep.subr.bf16.mxu1 %v1283_v52 }
 0xe26   :  { %v1236_v44 = vpop.eup %1235 }
 0xe27   :  { %v805_v36 = vadd.f32 1.0, %v1236_v44 }
 0xe29   :  { %1237 = vrcp.f32 %v805_v36 }
 0xe36   :  { %v1238_v49 = vpop.eup %1237 }
 0xe37   :  { %v812_v4 = vmul.f32 %v1238_v49, %v810_v45  ;;  %v823_v50 = vmul.f32 %v1238_v49, %v821_v47  ;;  %v815_v10 = vsub.f32 1.0, %v1238_v49 }
 0xe39   :  { %v813_v2 = vadd.f32 %v812_v4, %v1534_v31  ;;  %v1191_v31 = vld [vmem:[%s1648_s6 + $0x8] sm:$0xff]  }
 0xe3a   :  { %1156 = vmatpush3.bf16.msra.mxu1 %v1191_v31 }
 0xe3b   :  { %1239 = vtanh.f32 %v813_v2  ;;  %1157 = vmatprep.subr.bf16.mxu1 %v1283_v52 }
 0xe3e   :  { %1158 = vmatpush3.bf16.msra.mxu1 %v1192_v8 }
 0xe48   :  { %v1240_v6 = vpop.eup %1239 }
 0xe49   :  { %817 = vrot.lane.b32.xlu1 %v1240_v6, %s1282_s20 }
 0xe4d   :  { %335 = vrot.lane.b32.xlu1 %v1476_v17, %s1282_s20  ;;  %v582_v17 = vpop.permute.xlu0 %581 }
 0xe51   :  { %503 = vrot.lane.b32.xlu1 %v1516_v15, %s1282_s20  ;;  %v745_v13 = vpop.permute.xlu0 %744 }
 0xe55   :  { %662 = vrot.lane.b32.xlu1 %v1558_v59, %s1282_s20 }
 0xebb   :  { %v818_v11 = vpop.permute.xlu1 %817 }
 0xebc   :  { %v820_v15 = vmul.f32 %v818_v11, %v815_v10 }
 0xebe   :  { %v824_v53 = vadd.f32 %v823_v50, %v820_v15 }
 0xebf   :  { %v336_v12 = vpop.permute.xlu1 %335 }
 0xec0   :  { %339 = vst.msk [vmem:[#allocation2] sm:$0xc] %vm338_vm7, %v336_v12  ;;  %826 = vrot.lane.b32.xlu1 %v824_v53, %s1282_s20 }
 0xec1   :  { %341 = vst.msk [vmem:[#allocation2 + $0xa] sm:$0xc] %vm340_vm8, %v336_v12 }
 0xec2   :  { %747 = vst.msk [vmem:[#allocation2 + $0x8] sm:$0x30] %vm422_vm4, %v745_v13 }
 0xec3   :  { %748 = vst.msk [vmem:[#allocation2 - $0x2] sm:$0x30] %vm424_vm5, %v745_v13  ;;  %v504_v54 = vpop.permute.xlu1 %503 }
 0xec4   :  { %507 = vst.msk [vmem:[#allocation2] sm:$0xc0] %vm506_vm9, %v504_v54 }
 0xec5   :  { %509 = vst.msk [vmem:[#allocation2 + $0x2] sm:$0xc0] %vm508_vm10, %v504_v54 }
 0xec6   :  { %584 = vst.msk [vmem:[#allocation2 + $0x8] sm:$0x3] %vm255_vm2, %v582_v17 }
 0xec7   :  { %585 = vst.msk [vmem:[#allocation2 + $0x6] sm:$0x3] %vm257_vm3, %v582_v17  ;;  %v663_v55 = vpop.permute.xlu1 %662 }
 0xec8   :  { %665 = vst.msk [vmem:[#allocation2 + $0x8] sm:$0xc] %vm338_vm7, %v663_v55 }
 0xec9   :  { %666 = vst.msk [vmem:[#allocation2 + $0x2] sm:$0xc] %vm340_vm8, %v663_v55 }
 0xf32   :  { %v827_v56 = vpop.permute.xlu1 %826 }
 0xf33   :  { %829 = vst.msk [vmem:[#allocation2 + $0x8] sm:$0xc0] %vm506_vm9, %v827_v56 }
 0xf34   :  { %830 = vst.msk [vmem:[#allocation2 - $0x6] sm:$0xc0] %vm508_vm10, %v827_v56 }
 0xf35   :  { %832 = vst.msk [vmem:[%s1652_s10 - $0x6] sm:$0xc0] %vm831_vm11, %v827_v56  ;;  %s1259_s10 = scalar_lea.vmem %s1097_s8, 32 }
 0xf36   :  { %p1260_p0 = scmp.ne.s32.totalorder %s1097_s8, %s1259_s10  ;;  %p1265_p2 = scmp.lt.s32.totalorder %s1259_s10, %s1259_s10 }
 0xf38   :  { %p1266_p3 = por %p1265_p2, %p1264_p1 }
 0xf3a   :  { %v1618_v58 = vld [vmem:[#allocation2 + $0x8] sm:$0xff]  ;;  %p1267_p4 = pnand %p1266_p3, %p1260_p0 }
 0xf3b   :  { %v1616_v57 = vld [vmem:[#allocation2] sm:$0xff] }
 0xf3c   :  { %v835_v59 = vpack.c.bf16 %v1618_v58, %v1616_v57 }
 0xf3e   :  { %1160 = vmatmul.mubr.msk.bf16.vlgmr.msra.gmra.mxu1 %vm183_vm1, %v835_v59 }
 0xffe   :  { %v912_v61 = vpop.f32.mrf.mxu1 }
 0xfff   :  { %v913_v62 = vadd.f32 %v1139_v60, %v912_v61 }
0x1000   :  { %v1161_v63 = vpop.f32.mrf.mxu1 }
0x1001   :  { %v919_v3 = vmax.f32 %v913_v62, 0.0 }
0x1002   :  { %v915_v1 = vpop.f32.mrf.mxu1 }
0x1003   :  { %v916_v5 = vadd.f32 %v1139_v60, %v915_v1  ;;  %v928_v24 = vmul.f32 %v1145_v0, %v919_v3 }
0x1004   :  { %v1162_v7 = vpop.f32.mrf.mxu1 }
0x1005   :  { %v920_v9 = vmax.f32 %v916_v5, 0.0  ;;  %v930_v14 = vsel %vm183_vm1, %v928_v24, 0.0 }
0x1006   :  { %931 = vadd.xlane.f32.xlu0 %v930_v14 }
0x1007   :  { %v929_v16 = vmul.f32 %v1145_v0, %v920_v9 }
0x1009   :  { %v933_v18 = vsel %vm183_vm1, %v929_v16, 0.0 }
0x100a   :  { %934 = vadd.xlane.f32.xlu1 %v933_v18 }
0x108f   :  { %v932_v19 = vpop.xlane.xlu0 %931 }
0x1090   :  { %v937_v39 = vrot.slane %v932_v19, 2  ;;  %v940_v21 = vrot.slane %v932_v19, 4  ;;  %v943_v23 = vrot.slane %v932_v19, 6 }
0x1092   :  { %v939_v20 = vmax.f32 %v932_v19, %v937_v39 }
0x1093   :  { %v935_v26 = vpop.xlane.xlu1 %934 }
0x1094   :  { %v942_v22 = vmax.f32 %v939_v20, %v940_v21  ;;  %v948_v29 = vrot.slane %v935_v26, 2  ;;  %v951_v32 = vrot.slane %v935_v26, 4  ;;  %v954_v34 = vrot.slane %v935_v26, 6 }
0x1096   :  { %v945_v27 = vmax.f32 %v942_v22, %v943_v23 }
0x1098   :  { %v946_v28 = vmax.f32 %v945_v27, %v935_v26 }
0x109a   :  { %v950_v30 = vmax.f32 %v946_v28, %v948_v29 }
0x109c   :  { %v953_v33 = vmax.f32 %v950_v30, %v951_v32 }
0x109e   :  { %v956_v48 = vmax.f32 %v953_v33, %v954_v34 }
0x10a0   :  { %v961_v46 = vrot.slane %v956_v48, 6  ;;  %v966_v37 = vrot.slane %v956_v48, 4  ;;  %v971_v38 = vrot.slane %v956_v48, 2  ;;  %v976_v40 = vsub.f32 %v935_v26, %v956_v48 }
0x10a1   :  { %v957_v41 = vsub.f32 %v932_v19, %v956_v48 }
0x10a2   :  { %v963_v42 = vsub.f32 %v932_v19, %v961_v46  ;;  %v968_v43 = vsub.f32 %v932_v19, %v966_v37  ;;  %v973_v44 = vsub.f32 %v932_v19, %v971_v38  ;;  %v979_v49 = vsub.f32 %v935_v26, %v961_v46 }
0x10a3   :  { %v958_v36 = vmul.f32 1.442695, %v957_v41  ;;  %v977_v4 = vmul.f32 1.442695, %v976_v40  ;;  %v982_v50 = vsub.f32 %v935_v26, %v966_v37  ;;  %v985_v6 = vsub.f32 %v935_v26, %v971_v38 }
0x10a4   :  { %v964_v51 = vmul.f32 1.442695, %v963_v42  ;;  %v969_v45 = vmul.f32 1.442695, %v968_v43  ;;  %v974_v47 = vmul.f32 1.442695, %v973_v44 }
0x10a5   :  { %1241 = vpow2.f32 %v958_v36  ;;  %v980_v2 = vmul.f32 1.442695, %v979_v49  ;;  %v983_v25 = vmul.f32 1.442695, %v982_v50  ;;  %v986_v52 = vmul.f32 1.442695, %v985_v6 }
0x10a6   :  { %1243 = vpow2.f32 %v964_v51 }
0x10a7   :  { %1245 = vpow2.f32 %v969_v45 }
0x10a8   :  { %1247 = vpow2.f32 %v974_v47 }
0x10a9   :  { %1249 = vpow2.f32 %v977_v4 }
0x10aa   :  { %1251 = vpow2.f32 %v980_v2 }
0x10ab   :  { %1253 = vpow2.f32 %v983_v25 }
0x10ac   :  { %1255 = vpow2.f32 %v986_v52 }
0x10b2   :  { %v1242_v35 = vpop.eup %1241 }
0x10b3   :  { %v1244_v31 = vpop.eup %1243  ;;  %1016 = vperm.xlu1 %1169, %v1242_v35  }
0x10b4   :  { %v1246_v8 = vpop.eup %1245  ;;  %v989_v17 = vrot.slane %v1244_v31, 2  ;;  %1022 = vperm.xlu0 %1168, %v1244_v31  }
0x10b5   :  { %v1248_v10 = vpop.eup %1247  ;;  %v993_v15 = vrot.slane %v1246_v8, 4 }
0x10b6   :  { %v1250_v11 = vpop.eup %1249  ;;  %v991_v53 = vadd.f32 %v1242_v35, %v989_v17  ;;  %v997_v12 = vrot.slane %v1248_v10, 6 }
0x10b7   :  { %1050 = vperm.xlu1 %1169, %v1250_v11   ;;  %v1252_v54 = vpop.eup %1251 }
0x10b8   :  { %v995_v13 = vadd.f32 %v993_v15, %v991_v53  ;;  %v1254_v56 = vpop.eup %1253  ;;  %v1002_v59 = vrot.slane %v1252_v54, 2 }
0x10b9   :  { %v1256_v61 = vpop.eup %1255  ;;  %v1006_v62 = vrot.slane %v1254_v56, 4 }
0x10ba   :  { %v999_v55 = vadd.f32 %v997_v12, %v995_v13  ;;  %v1010_v3 = vrot.slane %v1256_v61, 6 }
0x10bb   :  { %1031 = vperm.xlu1 %1169, %v1246_v8  }
0x10bc   :  { %v1000_v60 = vadd.f32 %v1250_v11, %v999_v55 }
0x10be   :  { %v1004_v63 = vadd.f32 %v1002_v59, %v1000_v60 }
0x10bf   :  { %1040 = vperm.xlu1 %1169, %v1248_v10  }
0x10c0   :  { %v1008_v0 = vadd.f32 %v1006_v62, %v1004_v63 }
0x10c2   :  { %v1012_v1 = vadd.f32 %v1010_v3, %v1008_v0 }
0x10c3   :  { %1056 = vperm.xlu1 %1169, %v1252_v54  }
0x10c4   :  { %1257 = vrcp.f32 %v1012_v1 }
0x10c7   :  { %1065 = vperm.xlu1 %1169, %v1254_v56  }
0x10cb   :  { %1074 = vperm.xlu1 %1169, %v1256_v61  }
0x10d1   :  { %v1258_v5 = vpop.eup %1257 }
0x10d2   :  { %1084 = vperm.xlu0 %1168, %v1258_v5  }
0x112e   :  { %v1017_v24 = vpop.permute.xlu1 %1016 }
0x112f   :  { %v1023_v7 = vpop.permute.xlu0 %1022  ;;  %v1019_v39 = vmul.f32 %v1017_v24, %v1616_v57 }
0x1130   :  { %v1025_v14 = vmul.f32 %v1023_v7, %v1616_v57 }
0x1132   :  { %v1051_v9 = vpop.permute.xlu1 %1050  ;;  %v1027_v19 = vrot.slane %v1025_v14, 2 }
0x1133   :  { %v1053_v32 = vmul.f32 %v1051_v9, %v1618_v58 }
0x1134   :  { %v1029_v23 = vadd.f32 %v1027_v19, %v1019_v39 }
0x1136   :  { %v1032_v16 = vpop.permute.xlu1 %1031 }
0x1137   :  { %v1034_v18 = vmul.f32 %v1032_v16, %v1616_v57 }
0x1139   :  { %v1036_v20 = vrot.slane %v1034_v18, 4 }
0x113a   :  { %v1041_v21 = vpop.permute.xlu1 %1040 }
0x113b   :  { %v1043_v22 = vmul.f32 %v1041_v21, %v1616_v57  ;;  %v1038_v27 = vadd.f32 %v1036_v20, %v1029_v23 }
0x113d   :  { %v1045_v26 = vrot.slane %v1043_v22, 6 }
0x113e   :  { %v1057_v28 = vpop.permute.xlu1 %1056 }
0x113f   :  { %v1047_v29 = vadd.f32 %v1045_v26, %v1038_v27  ;;  %v1059_v30 = vmul.f32 %v1057_v28, %v1618_v58 }
0x1141   :  { %v1054_v48 = vadd.f32 %v1053_v32, %v1047_v29  ;;  %v1061_v46 = vrot.slane %v1059_v30, 2 }
0x1142   :  { %v1066_v33 = vpop.permute.xlu1 %1065 }
0x1143   :  { %v1068_v34 = vmul.f32 %v1066_v33, %v1618_v58  ;;  %v1063_v41 = vadd.f32 %v1061_v46, %v1054_v48 }
0x1145   :  { %v1070_v37 = vrot.slane %v1068_v34, 4 }
0x1146   :  { %v1075_v38 = vpop.permute.xlu1 %1074 }
0x1147   :  { %v1077_v40 = vmul.f32 %v1075_v38, %v1618_v58  ;;  %v1072_v42 = vadd.f32 %v1070_v37, %v1063_v41 }
0x1149   :  { %v1079_v57 = vrot.slane %v1077_v40, 6 }
0x114b   :  { %v1081_v43 = vadd.f32 %v1079_v57, %v1072_v42 }
0x114d   :  { %v1085_v44 = vpop.permute.xlu0 %1084 }
0x114e   :  { %v1087_v36 = vmul.f32 %v1085_v44, %v1081_v43 }
0x1150   :  { %1089 = vst.msk [vmem:[#allocation3] sm:$0x3] %vm1088_vm12, %v1087_v36 }
0x1151   :  { %1270 = shalt.err (!%p1267_p4)
}
0x1152   :  { %1099 = dma.vmem_to_hbm [thread:$0]  %s1097_s8, 32, %s1651_s9, [#allocation4]  }
0x1153   :  { %1279 = dma.done.wait [#allocation4], 32  }
0x1154   :  { %1280 = vsyncadd [#allocation4], 4294967264 }
0x1155   :  { %1107 = vsyncpa [#allocation4], 1 }

</bundles_post_ra>
